<compile_context>
chip_gen: v7x
topology: tpu7x:2x2x1
jax: 0.10.0
libtpu: 0.0.40
codegen_flags: <defaults>
</compile_context>

<pallas_src>
import functools

import jax
import jax.numpy as jnp
from jax.experimental import pallas as pl
from jax.experimental.pallas import tpu as pltpu


# ----------------------------------------------------------------------------
# Fused kernel: whole ExposedVisionTransformer forward for one batch element.
# ----------------------------------------------------------------------------

def _fused_vit_kernel(
    # inputs (blocks; weights are full arrays resident in VMEM)
    patches_ref, convw_ref, cls_ref, pos_ref,
    ln_pre_g_ref, ln_pre_b_ref,
    ln1_g_ref, ln1_b_ref, inw_ref, inb_ref, outw_ref, outb_ref,
    ln2_g_ref, ln2_b_ref, fc1w_ref, fc1b_ref, fc2w_ref, fc2b_ref,
    ln_post_g_ref, ln_post_b_ref, proj_ref,
    # outputs
    emb_ref, cls_out_ref, avg_out_ref,
    # scratch
    tok_scratch, attn_scratch,
    *, L, D, heads, n_layers, n_exposed):

  f32 = jnp.float32
  dh = D // heads
  scale = 1.0 / (dh ** 0.5)

  def _ln(x, g, b):
    mu = jnp.mean(x, axis=-1, keepdims=True)
    var = jnp.mean(jnp.square(x - mu), axis=-1, keepdims=True)
    return (x - mu) * jax.lax.rsqrt(var + 1e-5) * g + b

  # ---- patch embedding (conv1 as matmul) + cls token + positional embedding ----
  patches = patches_ref[0].astype(f32)                         # (Np, C*P*P)
  feat = jnp.dot(patches, convw_ref[...].astype(f32),
                 preferred_element_type=f32)                   # (Np, D)
  pos = pos_ref[...].astype(f32)                               # (L, D)
  tok_scratch[0:1, :] = cls_ref[...].astype(f32) + pos[0:1, :]
  tok_scratch[1:L, :] = feat + pos[1:L, :]

  # ln_pre fused right here (no standalone LN kernel)
  x = _ln(tok_scratch[...], ln_pre_g_ref[...], ln_pre_b_ref[...])    # (L, D)

  # ---- transformer layers (unrolled; all weights stay in VMEM) ----
  for li in range(n_layers):
    # attention branch: ln1 fused into the QKV projection
    h = _ln(x, ln1_g_ref[li], ln1_b_ref[li])
    qkv = jnp.dot(h, inw_ref[li], preferred_element_type=f32) + inb_ref[li]   # (L, 3D)

    for hh in range(heads):
      q = qkv[:, hh * dh:(hh + 1) * dh]                        # (L, dh)
      k = qkv[:, D + hh * dh:D + (hh + 1) * dh]                # (L, dh)
      v = qkv[:, 2 * D + hh * dh:2 * D + (hh + 1) * dh]        # (L, dh)
      s = jax.lax.dot_general(q, k, (((1,), (1,)), ((), ())),
                              preferred_element_type=f32) * scale            # (L, L)
      s = s - jnp.max(s, axis=-1, keepdims=True)
      p = jnp.exp(s)
      p = p * pl.reciprocal(jnp.sum(p, axis=-1, keepdims=True), approx=True)
      attn_scratch[:, hh * dh:(hh + 1) * dh] = jnp.dot(
          p, v, preferred_element_type=f32)                    # (L, dh) at lane offset

    o = jnp.dot(attn_scratch[...], outw_ref[li],
                preferred_element_type=f32) + outb_ref[li]     # (L, D)
    x = x + o                                                  # residual (in vregs)

    # MLP branch: ln2 fused into fc1, QuickGELU fused, residual folded in
    h2 = _ln(x, ln2_g_ref[li], ln2_b_ref[li])
    h2 = jnp.dot(h2, fc1w_ref[li], preferred_element_type=f32) + fc1b_ref[li]  # (L, M)
    h2 = h2 * jax.nn.sigmoid(1.702 * h2)                       # CLIP QuickGELU
    h2 = jnp.dot(h2, fc2w_ref[li], preferred_element_type=f32) + fc2b_ref[li]  # (L, D)
    x = x + h2

    # exposed-layer epilogue (cls token + mean over non-cls tokens), fused
    if li >= n_layers - n_exposed:
      e = li - (n_layers - n_exposed)
      # TODO(synk): torch accumulates the avg in float64; TPU has no f64, use f32.
      cls_out_ref[:, e:e + 1, :] = x[0:1, :][None]
      avg_out_ref[:, e:e + 1, :] = jnp.mean(x[1:, :], axis=0, keepdims=True)[None]

  # ---- ln_post on cls token + output projection ----
  x0 = _ln(x[0:1, :], ln_post_g_ref[...], ln_post_b_ref[...])  # (1, D)
  emb_ref[...] = jnp.dot(x0, proj_ref[...], preferred_element_type=f32)[None]


# ----------------------------------------------------------------------------
# Wrapper: layout glue + single pallas_call
# ----------------------------------------------------------------------------

def _full_spec(shape):
  zeros = (0,) * len(shape)
  return pl.BlockSpec(shape, lambda b, _z=zeros: _z)


def exposed_vit_forward(params, x):
  """x: (B, C, H, W) float32 (NCHW, like the torch module)."""
  f32 = jnp.float32
  B, C, H, W = x.shape
  P = params["patch_size"]
  D = params["width"]
  heads = params["heads"]
  gh, gw = H // P, W // P
  Np = gh * gw
  L = Np + 1
  CPP = C * P * P
  layers = params["layers"]
  nL = len(layers)
  n_exposed = params["num_layers_exposed"]
  out_dim = params["proj"].shape[1]
  M = layers[0]["fc1_w"].shape[1]

  # conv1 (stride=P, no bias) == patchify (pure layout glue) + in-kernel matmul
  patches3 = (x.reshape(B, C, gh, P, gw, P)
               .transpose(0, 2, 4, 1, 3, 5)
               .reshape(B, Np, CPP)).astype(f32)
  conv_w2d = params["conv1_w"].reshape(D, CPP).T.astype(f32)           # (CPP, D)

  stack = lambda name: jnp.stack([lyr[name] for lyr in layers]).astype(f32)
  ln1_g = stack("ln1_g").reshape(nL, 1, D)
  ln1_b = stack("ln1_b").reshape(nL, 1, D)
  inw = stack("in_proj_w")                                             # (nL, D, 3D)
  inb = stack("in_proj_b").reshape(nL, 1, 3 * D)
  outw = stack("out_proj_w")                                           # (nL, D, D)
  outb = stack("out_proj_b").reshape(nL, 1, D)
  ln2_g = stack("ln2_g").reshape(nL, 1, D)
  ln2_b = stack("ln2_b").reshape(nL, 1, D)
  fc1w = stack("fc1_w")                                                # (nL, D, M)
  fc1b = stack("fc1_b").reshape(nL, 1, M)
  fc2w = stack("fc2_w")                                                # (nL, M, D)
  fc2b = stack("fc2_b").reshape(nL, 1, D)

  cls2d = params["class_embedding"].reshape(1, D).astype(f32)
  pos = params["positional_embedding"].astype(f32)                     # (L, D)
  ln_pre_g = params["ln_pre_g"].reshape(1, D).astype(f32)
  ln_pre_b = params["ln_pre_b"].reshape(1, D).astype(f32)
  ln_post_g = params["ln_post_g"].reshape(1, D).astype(f32)
  ln_post_b = params["ln_post_b"].reshape(1, D).astype(f32)
  proj = params["proj"].astype(f32)                                    # (D, out_dim)

  operands = (patches3, conv_w2d, cls2d, pos, ln_pre_g, ln_pre_b,
              ln1_g, ln1_b, inw, inb, outw, outb,
              ln2_g, ln2_b, fc1w, fc1b, fc2w, fc2b,
              ln_post_g, ln_post_b, proj)

  in_specs = [pl.BlockSpec((1, Np, CPP), lambda b: (b, 0, 0))]          # per-batch patches
  in_specs += [_full_spec(op.shape) for op in operands[1:]]             # weights resident

  kernel = functools.partial(_fused_vit_kernel, L=L, D=D, heads=heads,
                             n_layers=nL, n_exposed=n_exposed)

  emb3, cls3, avg3 = pl.pallas_call(
      kernel,
      grid=(B,),
      in_specs=in_specs,
      out_specs=(
          pl.BlockSpec((1, 1, out_dim), lambda b: (b, 0, 0)),
          pl.BlockSpec((1, n_exposed, D), lambda b: (b, 0, 0)),
          pl.BlockSpec((1, n_exposed, D), lambda b: (b, 0, 0)),
      ),
      out_shape=(
          jax.ShapeDtypeStruct((B, 1, out_dim), f32),
          jax.ShapeDtypeStruct((B, n_exposed, D), f32),
          jax.ShapeDtypeStruct((B, n_exposed, D), f32),
      ),
      scratch_shapes=[
          pltpu.VMEM((L, D), f32),     # token assembly buffer
          pltpu.VMEM((L, D), f32),     # attention head re-interleave buffer
      ],
      compiler_params=pltpu.CompilerParams(dimension_semantics=("parallel",)),
  )(*operands)

  emb = emb3[:, 0, :]
  intermediate = [{"cls": cls3[:, e, :], "avg": avg3[:, e, :]} for e in range(n_exposed)]
  return emb, {"intermediate": intermediate, "embedding": emb}


# ----------------------------------------------------------------------------
# Deterministic parameter construction
# ----------------------------------------------------------------------------

def make_params(key, *, C, P, D, heads, mlp, n_layers, n_exposed, L, out_dim,
                dtype=jnp.float32):
  ks = iter(jax.random.split(key, 64))

  def rnd(shape, scale=0.02):
    return (scale * jax.random.normal(next(ks), shape)).astype(dtype)

  layers = []
  for _ in range(n_layers):
    layers.append(dict(
        ln1_g=jnp.ones((D,), dtype), ln1_b=jnp.zeros((D,), dtype),
        in_proj_w=rnd((D, 3 * D)), in_proj_b=jnp.zeros((3 * D,), dtype),
        out_proj_w=rnd((D, D)), out_proj_b=jnp.zeros((D,), dtype),
        ln2_g=jnp.ones((D,), dtype), ln2_b=jnp.zeros((D,), dtype),
        fc1_w=rnd((D, mlp)), fc1_b=jnp.zeros((mlp,), dtype),
        fc2_w=rnd((mlp, D)), fc2_b=jnp.zeros((D,), dtype),
    ))

  return dict(
      patch_size=P, width=D, heads=heads, num_layers_exposed=n_exposed,
      conv1_w=rnd((D, C, P, P)),
      class_embedding=rnd((D,)),
      positional_embedding=rnd((L, D)),
      ln_pre_g=jnp.ones((D,), dtype), ln_pre_b=jnp.zeros((D,), dtype),
      ln_post_g=jnp.ones((D,), dtype), ln_post_b=jnp.zeros((D,), dtype),
      proj=rnd((D, out_dim)),
      layers=layers,
  )


# ----------------------------------------------------------------------------
# Main
# ----------------------------------------------------------------------------

if __name__ == "__main__":
  B, C, H, W = 2, 3, 16, 16
  P, D, heads, mlp = 8, 32, 4, 128
  n_layers, n_exposed, out_dim = 2, 1, 16
  L = (H // P) * (W // P) + 1

  key = jax.random.PRNGKey(0)
  k_img, k_par = jax.random.split(key)
  x = jax.random.normal(k_img, (B, C, H, W), dtype=jnp.float32)
  params = make_params(k_par, C=C, P=P, D=D, heads=heads, mlp=mlp,
                       n_layers=n_layers, n_exposed=n_exposed, L=L,
                       out_dim=out_dim)

  emb, exposed = exposed_vit_forward(params, x)
  emb = jax.block_until_ready(emb)
  for item in exposed["intermediate"]:
    jax.block_until_ready(item["cls"])
    jax.block_until_ready(item["avg"])

  assert emb.shape == (B, out_dim)
  assert exposed["intermediate"][0]["cls"].shape == (B, D)
  assert exposed["intermediate"][0]["avg"].shape == (B, D)
  assert bool(jnp.all(jnp.isfinite(emb)))
  print("KERNEL_OK")
</pallas_src>

<mosaic_0001>
module attributes {stable_mosaic.version = 11 : i64} {
  func.func @_fused_vit_kernel(%arg0: i32, %arg1: memref<1x4x192xf32, #tpu.memory_space<vmem>>, %arg2: memref<192x32xf32, #tpu.memory_space<vmem>>, %arg3: memref<1x32xf32, #tpu.memory_space<vmem>>, %arg4: memref<5x32xf32, #tpu.memory_space<vmem>>, %arg5: memref<1x32xf32, #tpu.memory_space<vmem>>, %arg6: memref<1x32xf32, #tpu.memory_space<vmem>>, %arg7: memref<2x1x32xf32, #tpu.memory_space<vmem>>, %arg8: memref<2x1x32xf32, #tpu.memory_space<vmem>>, %arg9: memref<2x32x96xf32, #tpu.memory_space<vmem>>, %arg10: memref<2x1x96xf32, #tpu.memory_space<vmem>>, %arg11: memref<2x32x32xf32, #tpu.memory_space<vmem>>, %arg12: memref<2x1x32xf32, #tpu.memory_space<vmem>>, %arg13: memref<2x1x32xf32, #tpu.memory_space<vmem>>, %arg14: memref<2x1x32xf32, #tpu.memory_space<vmem>>, %arg15: memref<2x32x128xf32, #tpu.memory_space<vmem>>, %arg16: memref<2x1x128xf32, #tpu.memory_space<vmem>>, %arg17: memref<2x128x32xf32, #tpu.memory_space<vmem>>, %arg18: memref<2x1x32xf32, #tpu.memory_space<vmem>>, %arg19: memref<1x32xf32, #tpu.memory_space<vmem>>, %arg20: memref<1x32xf32, #tpu.memory_space<vmem>>, %arg21: memref<32x16xf32, #tpu.memory_space<vmem>>, %arg22: memref<1x1x16xf32, #tpu.memory_space<vmem>>, %arg23: memref<1x1x32xf32, #tpu.memory_space<vmem>>, %arg24: memref<1x1x32xf32, #tpu.memory_space<vmem>>, %arg25: memref<5x32xf32, #tpu.memory_space<vmem>>, %arg26: memref<5x32xf32, #tpu.memory_space<vmem>>) attributes {dimension_semantics = [#tpu.dimension_semantics<parallel>], iteration_bounds = array<i64: 2>, scalar_prefetch = 0 : i64, scratch_operands = 2 : i64, tpu.core_type = #tpu.core_type<tc>, window_params = [{transform_indices = @transform_0, window_bounds = array<i64: 1, 4, 192>}, {pipeline_mode = #tpu.pipeline_mode<synchronous>, transform_indices = @transform_1, window_bounds = array<i64: 192, 32>}, {pipeline_mode = #tpu.pipeline_mode<synchronous>, transform_indices = @transform_2, window_bounds = array<i64: 1, 32>}, {pipeline_mode = #tpu.pipeline_mode<synchronous>, transform_indices = @transform_3, window_bounds = array<i64: 5, 32>}, {pipeline_mode = #tpu.pipeline_mode<synchronous>, transform_indices = @transform_4, window_bounds = array<i64: 1, 32>}, {pipeline_mode = #tpu.pipeline_mode<synchronous>, transform_indices = @transform_5, window_bounds = array<i64: 1, 32>}, {pipeline_mode = #tpu.pipeline_mode<synchronous>, transform_indices = @transform_6, window_bounds = array<i64: 2, 1, 32>}, {pipeline_mode = #tpu.pipeline_mode<synchronous>, transform_indices = @transform_7, window_bounds = array<i64: 2, 1, 32>}, {pipeline_mode = #tpu.pipeline_mode<synchronous>, transform_indices = @transform_8, window_bounds = array<i64: 2, 32, 96>}, {pipeline_mode = #tpu.pipeline_mode<synchronous>, transform_indices = @transform_9, window_bounds = array<i64: 2, 1, 96>}, {pipeline_mode = #tpu.pipeline_mode<synchronous>, transform_indices = @transform_10, window_bounds = array<i64: 2, 32, 32>}, {pipeline_mode = #tpu.pipeline_mode<synchronous>, transform_indices = @transform_11, window_bounds = array<i64: 2, 1, 32>}, {pipeline_mode = #tpu.pipeline_mode<synchronous>, transform_indices = @transform_12, window_bounds = array<i64: 2, 1, 32>}, {pipeline_mode = #tpu.pipeline_mode<synchronous>, transform_indices = @transform_13, window_bounds = array<i64: 2, 1, 32>}, {pipeline_mode = #tpu.pipeline_mode<synchronous>, transform_indices = @transform_14, window_bounds = array<i64: 2, 32, 128>}, {pipeline_mode = #tpu.pipeline_mode<synchronous>, transform_indices = @transform_15, window_bounds = array<i64: 2, 1, 128>}, {pipeline_mode = #tpu.pipeline_mode<synchronous>, transform_indices = @transform_16, window_bounds = array<i64: 2, 128, 32>}, {pipeline_mode = #tpu.pipeline_mode<synchronous>, transform_indices = @transform_17, window_bounds = array<i64: 2, 1, 32>}, {pipeline_mode = #tpu.pipeline_mode<synchronous>, transform_indices = @transform_18, window_bounds = array<i64: 1, 32>}, {pipeline_mode = #tpu.pipeline_mode<synchronous>, transform_indices = @transform_19, window_bounds = array<i64: 1, 32>}, {pipeline_mode = #tpu.pipeline_mode<synchronous>, transform_indices = @transform_20, window_bounds = array<i64: 32, 16>}, {transform_indices = @transform_21, window_bounds = array<i64: 1, 1, 16>}, {transform_indices = @transform_22, window_bounds = array<i64: 1, 1, 32>}, {transform_indices = @transform_23, window_bounds = array<i64: 1, 1, 32>}]} {
    %c0 = arith.constant 0 : index
    %c0_0 = arith.constant 0 : index
    %c0_1 = arith.constant 0 : index
    %0 = vector.load %arg1[%c0, %c0_0, %c0_1] : memref<1x4x192xf32, #tpu.memory_space<vmem>>, vector<1x4x192xf32>
    %1 = vector.shape_cast %0 : vector<1x4x192xf32> to vector<4x192xf32>
    %c0_2 = arith.constant 0 : index
    %c0_3 = arith.constant 0 : index
    %2 = vector.load %arg2[%c0_2, %c0_3] : memref<192x32xf32, #tpu.memory_space<vmem>>, vector<192x32xf32>
    %cst = arith.constant dense<0.000000e+00> : vector<4x32xf32>
    %3 = tpu.matmul %1, %2, %cst {dimension_numbers = #tpu.dot_dimension_numbers<[1], [0], [0], [1], [0, 0, 1, 1], [], []>} : vector<4x192xf32>, vector<192x32xf32>, vector<4x32xf32> -> vector<4x32xf32>
    %c0_4 = arith.constant 0 : index
    %c0_5 = arith.constant 0 : index
    %4 = vector.load %arg4[%c0_4, %c0_5] : memref<5x32xf32, #tpu.memory_space<vmem>>, vector<5x32xf32>
    %c0_6 = arith.constant 0 : index
    %c0_7 = arith.constant 0 : index
    %5 = vector.load %arg3[%c0_6, %c0_7] : memref<1x32xf32, #tpu.memory_space<vmem>>, vector<1x32xf32>
    %6 = vector.extract_strided_slice %4 {offsets = [0, 0], sizes = [1, 32], strides = [1, 1]} : vector<5x32xf32> to vector<1x32xf32>
    %7 = arith.addf %5, %6 : vector<1x32xf32>
    %c0_8 = arith.constant 0 : index
    %c0_9 = arith.constant 0 : index
    %8 = vector.load %arg25[%c0_8, %c0_9] : memref<5x32xf32, #tpu.memory_space<vmem>>, vector<1x32xf32>
    tpu.vector_store %arg25[%c0_8, %c0_9], %7 {strides = array<i32>} : memref<5x32xf32, #tpu.memory_space<vmem>>, vector<1x32xf32>,
    %9 = vector.extract_strided_slice %4 {offsets = [1, 0], sizes = [4, 32], strides = [1, 1]} : vector<5x32xf32> to vector<4x32xf32>
    %10 = arith.addf %3, %9 : vector<4x32xf32>
    %c1 = arith.constant 1 : index
    %c0_10 = arith.constant 0 : index
    %11 = vector.load %arg25[%c1, %c0_10] : memref<5x32xf32, #tpu.memory_space<vmem>>, vector<4x32xf32>
    tpu.vector_store %arg25[%c1, %c0_10], %10 {strides = array<i32>} : memref<5x32xf32, #tpu.memory_space<vmem>>, vector<4x32xf32>,
    %c0_11 = arith.constant 0 : index
    %c0_12 = arith.constant 0 : index
    %12 = vector.load %arg25[%c0_11, %c0_12] : memref<5x32xf32, #tpu.memory_space<vmem>>, vector<5x32xf32>
    %c0_13 = arith.constant 0 : index
    %c0_14 = arith.constant 0 : index
    %13 = vector.load %arg5[%c0_13, %c0_14] : memref<1x32xf32, #tpu.memory_space<vmem>>, vector<1x32xf32>
    %c0_15 = arith.constant 0 : index
    %c0_16 = arith.constant 0 : index
    %14 = vector.load %arg6[%c0_15, %c0_16] : memref<1x32xf32, #tpu.memory_space<vmem>>, vector<1x32xf32>
    %cst_17 = arith.constant dense<0.000000e+00> : vector<5xf32>
    %15 = vector.multi_reduction <add>, %12, %cst_17 [1] : vector<5x32xf32> to vector<5xf32>
    %16 = vector.shape_cast %15 : vector<5xf32> to vector<5x1xf32>
    %cst_18 = arith.constant 3.200000e+01 : f32
    %17 = vector.broadcast %cst_18 : f32 to vector<5x1xf32>
    %18 = arith.divf %16, %17 : vector<5x1xf32>
    %19 = vector.broadcast %18 : vector<5x1xf32> to vector<5x32xf32>
    %20 = arith.subf %12, %19 : vector<5x32xf32>
    %21 = arith.mulf %20, %20 : vector<5x32xf32>
    %cst_19 = arith.constant dense<0.000000e+00> : vector<5xf32>
    %22 = vector.multi_reduction <add>, %21, %cst_19 [1] : vector<5x32xf32> to vector<5xf32>
    %23 = vector.shape_cast %22 : vector<5xf32> to vector<5x1xf32>
    %cst_20 = arith.constant 3.200000e+01 : f32
    %24 = vector.broadcast %cst_20 : f32 to vector<5x1xf32>
    %25 = arith.divf %23, %24 : vector<5x1xf32>
    %26 = vector.broadcast %18 : vector<5x1xf32> to vector<5x32xf32>
    %27 = arith.subf %12, %26 : vector<5x32xf32>
    %cst_21 = arith.constant 9.99999974E-6 : f32
    %28 = vector.broadcast %cst_21 : f32 to vector<5x1xf32>
    %29 = arith.addf %25, %28 : vector<5x1xf32>
    %30 = math.rsqrt %29 : vector<5x1xf32>
    %31 = vector.broadcast %30 : vector<5x1xf32> to vector<5x32xf32>
    %32 = arith.mulf %27, %31 : vector<5x32xf32>
    %33 = vector.broadcast %13 : vector<1x32xf32> to vector<5x32xf32>
    %34 = arith.mulf %32, %33 : vector<5x32xf32>
    %35 = vector.broadcast %14 : vector<1x32xf32> to vector<5x32xf32>
    %36 = arith.addf %34, %35 : vector<5x32xf32>
    %c0_22 = arith.constant 0 : index
    %c0_23 = arith.constant 0 : index
    %c0_24 = arith.constant 0 : index
    %37 = vector.load %arg7[%c0_22, %c0_23, %c0_24] : memref<2x1x32xf32, #tpu.memory_space<vmem>>, vector<1x1x32xf32>
    %38 = vector.shape_cast %37 : vector<1x1x32xf32> to vector<1x32xf32>
    %c0_25 = arith.constant 0 : index
    %c0_26 = arith.constant 0 : index
    %c0_27 = arith.constant 0 : index
    %39 = vector.load %arg8[%c0_25, %c0_26, %c0_27] : memref<2x1x32xf32, #tpu.memory_space<vmem>>, vector<1x1x32xf32>
    %40 = vector.shape_cast %39 : vector<1x1x32xf32> to vector<1x32xf32>
    %cst_28 = arith.constant dense<0.000000e+00> : vector<5xf32>
    %41 = vector.multi_reduction <add>, %36, %cst_28 [1] : vector<5x32xf32> to vector<5xf32>
    %42 = vector.shape_cast %41 : vector<5xf32> to vector<5x1xf32>
    %cst_29 = arith.constant 3.200000e+01 : f32
    %43 = vector.broadcast %cst_29 : f32 to vector<5x1xf32>
    %44 = arith.divf %42, %43 : vector<5x1xf32>
    %45 = vector.broadcast %44 : vector<5x1xf32> to vector<5x32xf32>
    %46 = arith.subf %36, %45 : vector<5x32xf32>
    %47 = arith.mulf %46, %46 : vector<5x32xf32>
    %cst_30 = arith.constant dense<0.000000e+00> : vector<5xf32>
    %48 = vector.multi_reduction <add>, %47, %cst_30 [1] : vector<5x32xf32> to vector<5xf32>
    %49 = vector.shape_cast %48 : vector<5xf32> to vector<5x1xf32>
    %cst_31 = arith.constant 3.200000e+01 : f32
    %50 = vector.broadcast %cst_31 : f32 to vector<5x1xf32>
    %51 = arith.divf %49, %50 : vector<5x1xf32>
    %52 = vector.broadcast %44 : vector<5x1xf32> to vector<5x32xf32>
    %53 = arith.subf %36, %52 : vector<5x32xf32>
    %cst_32 = arith.constant 9.99999974E-6 : f32
    %54 = vector.broadcast %cst_32 : f32 to vector<5x1xf32>
    %55 = arith.addf %51, %54 : vector<5x1xf32>
    %56 = math.rsqrt %55 : vector<5x1xf32>
    %57 = vector.broadcast %56 : vector<5x1xf32> to vector<5x32xf32>
    %58 = arith.mulf %53, %57 : vector<5x32xf32>
    %59 = vector.broadcast %38 : vector<1x32xf32> to vector<5x32xf32>
    %60 = arith.mulf %58, %59 : vector<5x32xf32>
    %61 = vector.broadcast %40 : vector<1x32xf32> to vector<5x32xf32>
    %62 = arith.addf %60, %61 : vector<5x32xf32>
    %c0_33 = arith.constant 0 : index
    %c0_34 = arith.constant 0 : index
    %c0_35 = arith.constant 0 : index
    %63 = vector.load %arg9[%c0_33, %c0_34, %c0_35] : memref<2x32x96xf32, #tpu.memory_space<vmem>>, vector<1x32x96xf32>
    %64 = vector.shape_cast %63 : vector<1x32x96xf32> to vector<32x96xf32>
    %cst_36 = arith.constant dense<0.000000e+00> : vector<5x96xf32>
    %65 = tpu.matmul %62, %64, %cst_36 {dimension_numbers = #tpu.dot_dimension_numbers<[1], [0], [0], [1], [0, 0, 1, 1], [], []>} : vector<5x32xf32>, vector<32x96xf32>, vector<5x96xf32> -> vector<5x96xf32>
    %c0_37 = arith.constant 0 : index
    %c0_38 = arith.constant 0 : index
    %c0_39 = arith.constant 0 : index
    %66 = vector.load %arg10[%c0_37, %c0_38, %c0_39] : memref<2x1x96xf32, #tpu.memory_space<vmem>>, vector<1x1x96xf32>
    %67 = vector.shape_cast %66 : vector<1x1x96xf32> to vector<1x96xf32>
    %68 = vector.broadcast %67 : vector<1x96xf32> to vector<5x96xf32>
    %69 = arith.addf %65, %68 : vector<5x96xf32>
    %70 = vector.extract_strided_slice %69 {offsets = [0, 0], sizes = [5, 8], strides = [1, 1]} : vector<5x96xf32> to vector<5x8xf32>
    %71 = vector.extract_strided_slice %69 {offsets = [0, 32], sizes = [5, 8], strides = [1, 1]} : vector<5x96xf32> to vector<5x8xf32>
    %72 = vector.extract_strided_slice %69 {offsets = [0, 64], sizes = [5, 8], strides = [1, 1]} : vector<5x96xf32> to vector<5x8xf32>
    %cst_40 = arith.constant dense<0.000000e+00> : vector<5x5xf32>
    %73 = tpu.matmul %70, %71, %cst_40 {dimension_numbers = #tpu.dot_dimension_numbers<[1], [1], [0], [0], [0, 0, 1, 0], [], []>} : vector<5x8xf32>, vector<5x8xf32>, vector<5x5xf32> -> vector<5x5xf32>
    %cst_41 = arith.constant 0.353553385 : f32
    %74 = vector.broadcast %cst_41 : f32 to vector<5x5xf32>
    %75 = arith.mulf %73, %74 : vector<5x5xf32>
    %cst_42 = arith.constant dense<0xFF800000> : vector<5xf32>
    %76 = vector.multi_reduction <maximumf>, %75, %cst_42 [1] : vector<5x5xf32> to vector<5xf32>
    %77 = vector.shape_cast %76 : vector<5xf32> to vector<5x1xf32>
    %78 = vector.broadcast %77 : vector<5x1xf32> to vector<5x5xf32>
    %79 = arith.subf %75, %78 : vector<5x5xf32>
    %80 = math.exp %79 : vector<5x5xf32>
    %cst_43 = arith.constant dense<0.000000e+00> : vector<5xf32>
    %81 = vector.multi_reduction <add>, %80, %cst_43 [1] : vector<5x5xf32> to vector<5xf32>
    %82 = vector.shape_cast %81 : vector<5xf32> to vector<5x1xf32>
    %83 = tpu.reciprocal %82 {approx = true} : vector<5x1xf32> -> vector<5x1xf32>
    %84 = vector.broadcast %83 : vector<5x1xf32> to vector<5x5xf32>
    %85 = arith.mulf %80, %84 : vector<5x5xf32>
    %cst_44 = arith.constant dense<0.000000e+00> : vector<5x8xf32>
    %86 = tpu.matmul %85, %72, %cst_44 {dimension_numbers = #tpu.dot_dimension_numbers<[1], [0], [0], [1], [0, 0, 1, 1], [], []>} : vector<5x5xf32>, vector<5x8xf32>, vector<5x8xf32> -> vector<5x8xf32>
    %c0_45 = arith.constant 0 : index
    %c0_46 = arith.constant 0 : index
    %87 = vector.load %arg26[%c0_45, %c0_46] : memref<5x32xf32, #tpu.memory_space<vmem>>, vector<5x8xf32>
    tpu.vector_store %arg26[%c0_45, %c0_46], %86 {strides = array<i32>} : memref<5x32xf32, #tpu.memory_space<vmem>>, vector<5x8xf32>,
    %88 = vector.extract_strided_slice %69 {offsets = [0, 8], sizes = [5, 8], strides = [1, 1]} : vector<5x96xf32> to vector<5x8xf32>
    %89 = vector.extract_strided_slice %69 {offsets = [0, 40], sizes = [5, 8], strides = [1, 1]} : vector<5x96xf32> to vector<5x8xf32>
    %90 = vector.extract_strided_slice %69 {offsets = [0, 72], sizes = [5, 8], strides = [1, 1]} : vector<5x96xf32> to vector<5x8xf32>
    %cst_47 = arith.constant dense<0.000000e+00> : vector<5x5xf32>
    %91 = tpu.matmul %88, %89, %cst_47 {dimension_numbers = #tpu.dot_dimension_numbers<[1], [1], [0], [0], [0, 0, 1, 0], [], []>} : vector<5x8xf32>, vector<5x8xf32>, vector<5x5xf32> -> vector<5x5xf32>
    %cst_48 = arith.constant 0.353553385 : f32
    %92 = vector.broadcast %cst_48 : f32 to vector<5x5xf32>
    %93 = arith.mulf %91, %92 : vector<5x5xf32>
    %cst_49 = arith.constant dense<0xFF800000> : vector<5xf32>
    %94 = vector.multi_reduction <maximumf>, %93, %cst_49 [1] : vector<5x5xf32> to vector<5xf32>
    %95 = vector.shape_cast %94 : vector<5xf32> to vector<5x1xf32>
    %96 = vector.broadcast %95 : vector<5x1xf32> to vector<5x5xf32>
    %97 = arith.subf %93, %96 : vector<5x5xf32>
    %98 = math.exp %97 : vector<5x5xf32>
    %cst_50 = arith.constant dense<0.000000e+00> : vector<5xf32>
    %99 = vector.multi_reduction <add>, %98, %cst_50 [1] : vector<5x5xf32> to vector<5xf32>
    %100 = vector.shape_cast %99 : vector<5xf32> to vector<5x1xf32>
    %101 = tpu.reciprocal %100 {approx = true} : vector<5x1xf32> -> vector<5x1xf32>
    %102 = vector.broadcast %101 : vector<5x1xf32> to vector<5x5xf32>
    %103 = arith.mulf %98, %102 : vector<5x5xf32>
    %cst_51 = arith.constant dense<0.000000e+00> : vector<5x8xf32>
    %104 = tpu.matmul %103, %90, %cst_51 {dimension_numbers = #tpu.dot_dimension_numbers<[1], [0], [0], [1], [0, 0, 1, 1], [], []>} : vector<5x5xf32>, vector<5x8xf32>, vector<5x8xf32> -> vector<5x8xf32>
    %c0_52 = arith.constant 0 : index
    %c8 = arith.constant 8 : index
    %105 = vector.load %arg26[%c0_52, %c8] : memref<5x32xf32, #tpu.memory_space<vmem>>, vector<5x8xf32>
    tpu.vector_store %arg26[%c0_52, %c8], %104 {strides = array<i32>} : memref<5x32xf32, #tpu.memory_space<vmem>>, vector<5x8xf32>,
    %106 = vector.extract_strided_slice %69 {offsets = [0, 16], sizes = [5, 8], strides = [1, 1]} : vector<5x96xf32> to vector<5x8xf32>
    %107 = vector.extract_strided_slice %69 {offsets = [0, 48], sizes = [5, 8], strides = [1, 1]} : vector<5x96xf32> to vector<5x8xf32>
    %108 = vector.extract_strided_slice %69 {offsets = [0, 80], sizes = [5, 8], strides = [1, 1]} : vector<5x96xf32> to vector<5x8xf32>
    %cst_53 = arith.constant dense<0.000000e+00> : vector<5x5xf32>
    %109 = tpu.matmul %106, %107, %cst_53 {dimension_numbers = #tpu.dot_dimension_numbers<[1], [1], [0], [0], [0, 0, 1, 0], [], []>} : vector<5x8xf32>, vector<5x8xf32>, vector<5x5xf32> -> vector<5x5xf32>
    %cst_54 = arith.constant 0.353553385 : f32
    %110 = vector.broadcast %cst_54 : f32 to vector<5x5xf32>
    %111 = arith.mulf %109, %110 : vector<5x5xf32>
    %cst_55 = arith.constant dense<0xFF800000> : vector<5xf32>
    %112 = vector.multi_reduction <maximumf>, %111, %cst_55 [1] : vector<5x5xf32> to vector<5xf32>
    %113 = vector.shape_cast %112 : vector<5xf32> to vector<5x1xf32>
    %114 = vector.broadcast %113 : vector<5x1xf32> to vector<5x5xf32>
    %115 = arith.subf %111, %114 : vector<5x5xf32>
    %116 = math.exp %115 : vector<5x5xf32>
    %cst_56 = arith.constant dense<0.000000e+00> : vector<5xf32>
    %117 = vector.multi_reduction <add>, %116, %cst_56 [1] : vector<5x5xf32> to vector<5xf32>
    %118 = vector.shape_cast %117 : vector<5xf32> to vector<5x1xf32>
    %119 = tpu.reciprocal %118 {approx = true} : vector<5x1xf32> -> vector<5x1xf32>
    %120 = vector.broadcast %119 : vector<5x1xf32> to vector<5x5xf32>
    %121 = arith.mulf %116, %120 : vector<5x5xf32>
    %cst_57 = arith.constant dense<0.000000e+00> : vector<5x8xf32>
    %122 = tpu.matmul %121, %108, %cst_57 {dimension_numbers = #tpu.dot_dimension_numbers<[1], [0], [0], [1], [0, 0, 1, 1], [], []>} : vector<5x5xf32>, vector<5x8xf32>, vector<5x8xf32> -> vector<5x8xf32>
    %c0_58 = arith.constant 0 : index
    %c16 = arith.constant 16 : index
    %123 = vector.load %arg26[%c0_58, %c16] : memref<5x32xf32, #tpu.memory_space<vmem>>, vector<5x8xf32>
    tpu.vector_store %arg26[%c0_58, %c16], %122 {strides = array<i32>} : memref<5x32xf32, #tpu.memory_space<vmem>>, vector<5x8xf32>,
    %124 = vector.extract_strided_slice %69 {offsets = [0, 24], sizes = [5, 8], strides = [1, 1]} : vector<5x96xf32> to vector<5x8xf32>
    %125 = vector.extract_strided_slice %69 {offsets = [0, 56], sizes = [5, 8], strides = [1, 1]} : vector<5x96xf32> to vector<5x8xf32>
    %126 = vector.extract_strided_slice %69 {offsets = [0, 88], sizes = [5, 8], strides = [1, 1]} : vector<5x96xf32> to vector<5x8xf32>
    %cst_59 = arith.constant dense<0.000000e+00> : vector<5x5xf32>
    %127 = tpu.matmul %124, %125, %cst_59 {dimension_numbers = #tpu.dot_dimension_numbers<[1], [1], [0], [0], [0, 0, 1, 0], [], []>} : vector<5x8xf32>, vector<5x8xf32>, vector<5x5xf32> -> vector<5x5xf32>
    %cst_60 = arith.constant 0.353553385 : f32
    %128 = vector.broadcast %cst_60 : f32 to vector<5x5xf32>
    %129 = arith.mulf %127, %128 : vector<5x5xf32>
    %cst_61 = arith.constant dense<0xFF800000> : vector<5xf32>
    %130 = vector.multi_reduction <maximumf>, %129, %cst_61 [1] : vector<5x5xf32> to vector<5xf32>
    %131 = vector.shape_cast %130 : vector<5xf32> to vector<5x1xf32>
    %132 = vector.broadcast %131 : vector<5x1xf32> to vector<5x5xf32>
    %133 = arith.subf %129, %132 : vector<5x5xf32>
    %134 = math.exp %133 : vector<5x5xf32>
    %cst_62 = arith.constant dense<0.000000e+00> : vector<5xf32>
    %135 = vector.multi_reduction <add>, %134, %cst_62 [1] : vector<5x5xf32> to vector<5xf32>
    %136 = vector.shape_cast %135 : vector<5xf32> to vector<5x1xf32>
    %137 = tpu.reciprocal %136 {approx = true} : vector<5x1xf32> -> vector<5x1xf32>
    %138 = vector.broadcast %137 : vector<5x1xf32> to vector<5x5xf32>
    %139 = arith.mulf %134, %138 : vector<5x5xf32>
    %cst_63 = arith.constant dense<0.000000e+00> : vector<5x8xf32>
    %140 = tpu.matmul %139, %126, %cst_63 {dimension_numbers = #tpu.dot_dimension_numbers<[1], [0], [0], [1], [0, 0, 1, 1], [], []>} : vector<5x5xf32>, vector<5x8xf32>, vector<5x8xf32> -> vector<5x8xf32>
    %c0_64 = arith.constant 0 : index
    %c24 = arith.constant 24 : index
    %141 = vector.load %arg26[%c0_64, %c24] : memref<5x32xf32, #tpu.memory_space<vmem>>, vector<5x8xf32>
    tpu.vector_store %arg26[%c0_64, %c24], %140 {strides = array<i32>} : memref<5x32xf32, #tpu.memory_space<vmem>>, vector<5x8xf32>,
    %c0_65 = arith.constant 0 : index
    %c0_66 = arith.constant 0 : index
    %142 = vector.load %arg26[%c0_65, %c0_66] : memref<5x32xf32, #tpu.memory_space<vmem>>, vector<5x32xf32>
    %c0_67 = arith.constant 0 : index
    %c0_68 = arith.constant 0 : index
    %c0_69 = arith.constant 0 : index
    %143 = vector.load %arg11[%c0_67, %c0_68, %c0_69] : memref<2x32x32xf32, #tpu.memory_space<vmem>>, vector<1x32x32xf32>
    %144 = vector.shape_cast %143 : vector<1x32x32xf32> to vector<32x32xf32>
    %cst_70 = arith.constant dense<0.000000e+00> : vector<5x32xf32>
    %145 = tpu.matmul %142, %144, %cst_70 {dimension_numbers = #tpu.dot_dimension_numbers<[1], [0], [0], [1], [0, 0, 1, 1], [], []>} : vector<5x32xf32>, vector<32x32xf32>, vector<5x32xf32> -> vector<5x32xf32>
    %c0_71 = arith.constant 0 : index
    %c0_72 = arith.constant 0 : index
    %c0_73 = arith.constant 0 : index
    %146 = vector.load %arg12[%c0_71, %c0_72, %c0_73] : memref<2x1x32xf32, #tpu.memory_space<vmem>>, vector<1x1x32xf32>
    %147 = vector.shape_cast %146 : vector<1x1x32xf32> to vector<1x32xf32>
    %148 = vector.broadcast %147 : vector<1x32xf32> to vector<5x32xf32>
    %149 = arith.addf %145, %148 : vector<5x32xf32>
    %150 = arith.addf %36, %149 : vector<5x32xf32>
    %c0_74 = arith.constant 0 : index
    %c0_75 = arith.constant 0 : index
    %c0_76 = arith.constant 0 : index
    %151 = vector.load %arg13[%c0_74, %c0_75, %c0_76] : memref<2x1x32xf32, #tpu.memory_space<vmem>>, vector<1x1x32xf32>
    %152 = vector.shape_cast %151 : vector<1x1x32xf32> to vector<1x32xf32>
    %c0_77 = arith.constant 0 : index
    %c0_78 = arith.constant 0 : index
    %c0_79 = arith.constant 0 : index
    %153 = vector.load %arg14[%c0_77, %c0_78, %c0_79] : memref<2x1x32xf32, #tpu.memory_space<vmem>>, vector<1x1x32xf32>
    %154 = vector.shape_cast %153 : vector<1x1x32xf32> to vector<1x32xf32>
    %cst_80 = arith.constant dense<0.000000e+00> : vector<5xf32>
    %155 = vector.multi_reduction <add>, %150, %cst_80 [1] : vector<5x32xf32> to vector<5xf32>
    %156 = vector.shape_cast %155 : vector<5xf32> to vector<5x1xf32>
    %cst_81 = arith.constant 3.200000e+01 : f32
    %157 = vector.broadcast %cst_81 : f32 to vector<5x1xf32>
    %158 = arith.divf %156, %157 : vector<5x1xf32>
    %159 = vector.broadcast %158 : vector<5x1xf32> to vector<5x32xf32>
    %160 = arith.subf %150, %159 : vector<5x32xf32>
    %161 = arith.mulf %160, %160 : vector<5x32xf32>
    %cst_82 = arith.constant dense<0.000000e+00> : vector<5xf32>
    %162 = vector.multi_reduction <add>, %161, %cst_82 [1] : vector<5x32xf32> to vector<5xf32>
    %163 = vector.shape_cast %162 : vector<5xf32> to vector<5x1xf32>
    %cst_83 = arith.constant 3.200000e+01 : f32
    %164 = vector.broadcast %cst_83 : f32 to vector<5x1xf32>
    %165 = arith.divf %163, %164 : vector<5x1xf32>
    %166 = vector.broadcast %158 : vector<5x1xf32> to vector<5x32xf32>
    %167 = arith.subf %150, %166 : vector<5x32xf32>
    %cst_84 = arith.constant 9.99999974E-6 : f32
    %168 = vector.broadcast %cst_84 : f32 to vector<5x1xf32>
    %169 = arith.addf %165, %168 : vector<5x1xf32>
    %170 = math.rsqrt %169 : vector<5x1xf32>
    %171 = vector.broadcast %170 : vector<5x1xf32> to vector<5x32xf32>
    %172 = arith.mulf %167, %171 : vector<5x32xf32>
    %173 = vector.broadcast %152 : vector<1x32xf32> to vector<5x32xf32>
    %174 = arith.mulf %172, %173 : vector<5x32xf32>
    %175 = vector.broadcast %154 : vector<1x32xf32> to vector<5x32xf32>
    %176 = arith.addf %174, %175 : vector<5x32xf32>
    %c0_85 = arith.constant 0 : index
    %c0_86 = arith.constant 0 : index
    %c0_87 = arith.constant 0 : index
    %177 = vector.load %arg15[%c0_85, %c0_86, %c0_87] : memref<2x32x128xf32, #tpu.memory_space<vmem>>, vector<1x32x128xf32>
    %178 = vector.shape_cast %177 : vector<1x32x128xf32> to vector<32x128xf32>
    %cst_88 = arith.constant dense<0.000000e+00> : vector<5x128xf32>
    %179 = tpu.matmul %176, %178, %cst_88 {dimension_numbers = #tpu.dot_dimension_numbers<[1], [0], [0], [1], [0, 0, 1, 1], [], []>} : vector<5x32xf32>, vector<32x128xf32>, vector<5x128xf32> -> vector<5x128xf32>
    %c0_89 = arith.constant 0 : index
    %c0_90 = arith.constant 0 : index
    %c0_91 = arith.constant 0 : index
    %180 = vector.load %arg16[%c0_89, %c0_90, %c0_91] : memref<2x1x128xf32, #tpu.memory_space<vmem>>, vector<1x1x128xf32>
    %181 = vector.shape_cast %180 : vector<1x1x128xf32> to vector<1x128xf32>
    %182 = vector.broadcast %181 : vector<1x128xf32> to vector<5x128xf32>
    %183 = arith.addf %179, %182 : vector<5x128xf32>
    %cst_92 = arith.constant 1.702000e+00 : f32
    %184 = vector.broadcast %cst_92 : f32 to vector<5x128xf32>
    %185 = arith.mulf %184, %183 : vector<5x128xf32>
    %186 = arith.negf %185 : vector<5x128xf32>
    %187 = math.exp %186 : vector<5x128xf32>
    %cst_93 = arith.constant 1.000000e+00 : f32
    %188 = vector.broadcast %cst_93 : f32 to vector<5x128xf32>
    %189 = arith.addf %188, %187 : vector<5x128xf32>
    %190 = arith.divf %188, %189 : vector<5x128xf32>
    %191 = arith.mulf %183, %190 : vector<5x128xf32>
    %c0_94 = arith.constant 0 : index
    %c0_95 = arith.constant 0 : index
    %c0_96 = arith.constant 0 : index
    %192 = vector.load %arg17[%c0_94, %c0_95, %c0_96] : memref<2x128x32xf32, #tpu.memory_space<vmem>>, vector<1x128x32xf32>
    %193 = vector.shape_cast %192 : vector<1x128x32xf32> to vector<128x32xf32>
    %cst_97 = arith.constant dense<0.000000e+00> : vector<5x32xf32>
    %194 = tpu.matmul %191, %193, %cst_97 {dimension_numbers = #tpu.dot_dimension_numbers<[1], [0], [0], [1], [0, 0, 1, 1], [], []>} : vector<5x128xf32>, vector<128x32xf32>, vector<5x32xf32> -> vector<5x32xf32>
    %c0_98 = arith.constant 0 : index
    %c0_99 = arith.constant 0 : index
    %c0_100 = arith.constant 0 : index
    %195 = vector.load %arg18[%c0_98, %c0_99, %c0_100] : memref<2x1x32xf32, #tpu.memory_space<vmem>>, vector<1x1x32xf32>
    %196 = vector.shape_cast %195 : vector<1x1x32xf32> to vector<1x32xf32>
    %197 = vector.broadcast %196 : vector<1x32xf32> to vector<5x32xf32>
    %198 = arith.addf %194, %197 : vector<5x32xf32>
    %199 = arith.addf %150, %198 : vector<5x32xf32>
    %c1_101 = arith.constant 1 : index
    %c0_102 = arith.constant 0 : index
    %c0_103 = arith.constant 0 : index
    %200 = vector.load %arg7[%c1_101, %c0_102, %c0_103] : memref<2x1x32xf32, #tpu.memory_space<vmem>>, vector<1x1x32xf32>
    %201 = vector.shape_cast %200 : vector<1x1x32xf32> to vector<1x32xf32>
    %c1_104 = arith.constant 1 : index
    %c0_105 = arith.constant 0 : index
    %c0_106 = arith.constant 0 : index
    %202 = vector.load %arg8[%c1_104, %c0_105, %c0_106] : memref<2x1x32xf32, #tpu.memory_space<vmem>>, vector<1x1x32xf32>
    %203 = vector.shape_cast %202 : vector<1x1x32xf32> to vector<1x32xf32>
    %cst_107 = arith.constant dense<0.000000e+00> : vector<5xf32>
    %204 = vector.multi_reduction <add>, %199, %cst_107 [1] : vector<5x32xf32> to vector<5xf32>
    %205 = vector.shape_cast %204 : vector<5xf32> to vector<5x1xf32>
    %cst_108 = arith.constant 3.200000e+01 : f32
    %206 = vector.broadcast %cst_108 : f32 to vector<5x1xf32>
    %207 = arith.divf %205, %206 : vector<5x1xf32>
    %208 = vector.broadcast %207 : vector<5x1xf32> to vector<5x32xf32>
    %209 = arith.subf %199, %208 : vector<5x32xf32>
    %210 = arith.mulf %209, %209 : vector<5x32xf32>
    %cst_109 = arith.constant dense<0.000000e+00> : vector<5xf32>
    %211 = vector.multi_reduction <add>, %210, %cst_109 [1] : vector<5x32xf32> to vector<5xf32>
    %212 = vector.shape_cast %211 : vector<5xf32> to vector<5x1xf32>
    %cst_110 = arith.constant 3.200000e+01 : f32
    %213 = vector.broadcast %cst_110 : f32 to vector<5x1xf32>
    %214 = arith.divf %212, %213 : vector<5x1xf32>
    %215 = vector.broadcast %207 : vector<5x1xf32> to vector<5x32xf32>
    %216 = arith.subf %199, %215 : vector<5x32xf32>
    %cst_111 = arith.constant 9.99999974E-6 : f32
    %217 = vector.broadcast %cst_111 : f32 to vector<5x1xf32>
    %218 = arith.addf %214, %217 : vector<5x1xf32>
    %219 = math.rsqrt %218 : vector<5x1xf32>
    %220 = vector.broadcast %219 : vector<5x1xf32> to vector<5x32xf32>
    %221 = arith.mulf %216, %220 : vector<5x32xf32>
    %222 = vector.broadcast %201 : vector<1x32xf32> to vector<5x32xf32>
    %223 = arith.mulf %221, %222 : vector<5x32xf32>
    %224 = vector.broadcast %203 : vector<1x32xf32> to vector<5x32xf32>
    %225 = arith.addf %223, %224 : vector<5x32xf32>
    %c1_112 = arith.constant 1 : index
    %c0_113 = arith.constant 0 : index
    %c0_114 = arith.constant 0 : index
    %226 = vector.load %arg9[%c1_112, %c0_113, %c0_114] : memref<2x32x96xf32, #tpu.memory_space<vmem>>, vector<1x32x96xf32>
    %227 = vector.shape_cast %226 : vector<1x32x96xf32> to vector<32x96xf32>
    %cst_115 = arith.constant dense<0.000000e+00> : vector<5x96xf32>
    %228 = tpu.matmul %225, %227, %cst_115 {dimension_numbers = #tpu.dot_dimension_numbers<[1], [0], [0], [1], [0, 0, 1, 1], [], []>} : vector<5x32xf32>, vector<32x96xf32>, vector<5x96xf32> -> vector<5x96xf32>
    %c1_116 = arith.constant 1 : index
    %c0_117 = arith.constant 0 : index
    %c0_118 = arith.constant 0 : index
    %229 = vector.load %arg10[%c1_116, %c0_117, %c0_118] : memref<2x1x96xf32, #tpu.memory_space<vmem>>, vector<1x1x96xf32>
    %230 = vector.shape_cast %229 : vector<1x1x96xf32> to vector<1x96xf32>
    %231 = vector.broadcast %230 : vector<1x96xf32> to vector<5x96xf32>
    %232 = arith.addf %228, %231 : vector<5x96xf32>
    %233 = vector.extract_strided_slice %232 {offsets = [0, 0], sizes = [5, 8], strides = [1, 1]} : vector<5x96xf32> to vector<5x8xf32>
    %234 = vector.extract_strided_slice %232 {offsets = [0, 32], sizes = [5, 8], strides = [1, 1]} : vector<5x96xf32> to vector<5x8xf32>
    %235 = vector.extract_strided_slice %232 {offsets = [0, 64], sizes = [5, 8], strides = [1, 1]} : vector<5x96xf32> to vector<5x8xf32>
    %cst_119 = arith.constant dense<0.000000e+00> : vector<5x5xf32>
    %236 = tpu.matmul %233, %234, %cst_119 {dimension_numbers = #tpu.dot_dimension_numbers<[1], [1], [0], [0], [0, 0, 1, 0], [], []>} : vector<5x8xf32>, vector<5x8xf32>, vector<5x5xf32> -> vector<5x5xf32>
    %cst_120 = arith.constant 0.353553385 : f32
    %237 = vector.broadcast %cst_120 : f32 to vector<5x5xf32>
    %238 = arith.mulf %236, %237 : vector<5x5xf32>
    %cst_121 = arith.constant dense<0xFF800000> : vector<5xf32>
    %239 = vector.multi_reduction <maximumf>, %238, %cst_121 [1] : vector<5x5xf32> to vector<5xf32>
    %240 = vector.shape_cast %239 : vector<5xf32> to vector<5x1xf32>
    %241 = vector.broadcast %240 : vector<5x1xf32> to vector<5x5xf32>
    %242 = arith.subf %238, %241 : vector<5x5xf32>
    %243 = math.exp %242 : vector<5x5xf32>
    %cst_122 = arith.constant dense<0.000000e+00> : vector<5xf32>
    %244 = vector.multi_reduction <add>, %243, %cst_122 [1] : vector<5x5xf32> to vector<5xf32>
    %245 = vector.shape_cast %244 : vector<5xf32> to vector<5x1xf32>
    %246 = tpu.reciprocal %245 {approx = true} : vector<5x1xf32> -> vector<5x1xf32>
    %247 = vector.broadcast %246 : vector<5x1xf32> to vector<5x5xf32>
    %248 = arith.mulf %243, %247 : vector<5x5xf32>
    %cst_123 = arith.constant dense<0.000000e+00> : vector<5x8xf32>
    %249 = tpu.matmul %248, %235, %cst_123 {dimension_numbers = #tpu.dot_dimension_numbers<[1], [0], [0], [1], [0, 0, 1, 1], [], []>} : vector<5x5xf32>, vector<5x8xf32>, vector<5x8xf32> -> vector<5x8xf32>
    %c0_124 = arith.constant 0 : index
    %c0_125 = arith.constant 0 : index
    %250 = vector.load %arg26[%c0_124, %c0_125] : memref<5x32xf32, #tpu.memory_space<vmem>>, vector<5x8xf32>
    tpu.vector_store %arg26[%c0_124, %c0_125], %249 {strides = array<i32>} : memref<5x32xf32, #tpu.memory_space<vmem>>, vector<5x8xf32>,
    %251 = vector.extract_strided_slice %232 {offsets = [0, 8], sizes = [5, 8], strides = [1, 1]} : vector<5x96xf32> to vector<5x8xf32>
    %252 = vector.extract_strided_slice %232 {offsets = [0, 40], sizes = [5, 8], strides = [1, 1]} : vector<5x96xf32> to vector<5x8xf32>
    %253 = vector.extract_strided_slice %232 {offsets = [0, 72], sizes = [5, 8], strides = [1, 1]} : vector<5x96xf32> to vector<5x8xf32>
    %cst_126 = arith.constant dense<0.000000e+00> : vector<5x5xf32>
    %254 = tpu.matmul %251, %252, %cst_126 {dimension_numbers = #tpu.dot_dimension_numbers<[1], [1], [0], [0], [0, 0, 1, 0], [], []>} : vector<5x8xf32>, vector<5x8xf32>, vector<5x5xf32> -> vector<5x5xf32>
    %cst_127 = arith.constant 0.353553385 : f32
    %255 = vector.broadcast %cst_127 : f32 to vector<5x5xf32>
    %256 = arith.mulf %254, %255 : vector<5x5xf32>
    %cst_128 = arith.constant dense<0xFF800000> : vector<5xf32>
    %257 = vector.multi_reduction <maximumf>, %256, %cst_128 [1] : vector<5x5xf32> to vector<5xf32>
    %258 = vector.shape_cast %257 : vector<5xf32> to vector<5x1xf32>
    %259 = vector.broadcast %258 : vector<5x1xf32> to vector<5x5xf32>
    %260 = arith.subf %256, %259 : vector<5x5xf32>
    %261 = math.exp %260 : vector<5x5xf32>
    %cst_129 = arith.constant dense<0.000000e+00> : vector<5xf32>
    %262 = vector.multi_reduction <add>, %261, %cst_129 [1] : vector<5x5xf32> to vector<5xf32>
    %263 = vector.shape_cast %262 : vector<5xf32> to vector<5x1xf32>
    %264 = tpu.reciprocal %263 {approx = true} : vector<5x1xf32> -> vector<5x1xf32>
    %265 = vector.broadcast %264 : vector<5x1xf32> to vector<5x5xf32>
    %266 = arith.mulf %261, %265 : vector<5x5xf32>
    %cst_130 = arith.constant dense<0.000000e+00> : vector<5x8xf32>
    %267 = tpu.matmul %266, %253, %cst_130 {dimension_numbers = #tpu.dot_dimension_numbers<[1], [0], [0], [1], [0, 0, 1, 1], [], []>} : vector<5x5xf32>, vector<5x8xf32>, vector<5x8xf32> -> vector<5x8xf32>
    %c0_131 = arith.constant 0 : index
    %c8_132 = arith.constant 8 : index
    %268 = vector.load %arg26[%c0_131, %c8_132] : memref<5x32xf32, #tpu.memory_space<vmem>>, vector<5x8xf32>
    tpu.vector_store %arg26[%c0_131, %c8_132], %267 {strides = array<i32>} : memref<5x32xf32, #tpu.memory_space<vmem>>, vector<5x8xf32>,
    %269 = vector.extract_strided_slice %232 {offsets = [0, 16], sizes = [5, 8], strides = [1, 1]} : vector<5x96xf32> to vector<5x8xf32>
    %270 = vector.extract_strided_slice %232 {offsets = [0, 48], sizes = [5, 8], strides = [1, 1]} : vector<5x96xf32> to vector<5x8xf32>
    %271 = vector.extract_strided_slice %232 {offsets = [0, 80], sizes = [5, 8], strides = [1, 1]} : vector<5x96xf32> to vector<5x8xf32>
    %cst_133 = arith.constant dense<0.000000e+00> : vector<5x5xf32>
    %272 = tpu.matmul %269, %270, %cst_133 {dimension_numbers = #tpu.dot_dimension_numbers<[1], [1], [0], [0], [0, 0, 1, 0], [], []>} : vector<5x8xf32>, vector<5x8xf32>, vector<5x5xf32> -> vector<5x5xf32>
    %cst_134 = arith.constant 0.353553385 : f32
    %273 = vector.broadcast %cst_134 : f32 to vector<5x5xf32>
    %274 = arith.mulf %272, %273 : vector<5x5xf32>
    %cst_135 = arith.constant dense<0xFF800000> : vector<5xf32>
    %275 = vector.multi_reduction <maximumf>, %274, %cst_135 [1] : vector<5x5xf32> to vector<5xf32>
    %276 = vector.shape_cast %275 : vector<5xf32> to vector<5x1xf32>
    %277 = vector.broadcast %276 : vector<5x1xf32> to vector<5x5xf32>
    %278 = arith.subf %274, %277 : vector<5x5xf32>
    %279 = math.exp %278 : vector<5x5xf32>
    %cst_136 = arith.constant dense<0.000000e+00> : vector<5xf32>
    %280 = vector.multi_reduction <add>, %279, %cst_136 [1] : vector<5x5xf32> to vector<5xf32>
    %281 = vector.shape_cast %280 : vector<5xf32> to vector<5x1xf32>
    %282 = tpu.reciprocal %281 {approx = true} : vector<5x1xf32> -> vector<5x1xf32>
    %283 = vector.broadcast %282 : vector<5x1xf32> to vector<5x5xf32>
    %284 = arith.mulf %279, %283 : vector<5x5xf32>
    %cst_137 = arith.constant dense<0.000000e+00> : vector<5x8xf32>
    %285 = tpu.matmul %284, %271, %cst_137 {dimension_numbers = #tpu.dot_dimension_numbers<[1], [0], [0], [1], [0, 0, 1, 1], [], []>} : vector<5x5xf32>, vector<5x8xf32>, vector<5x8xf32> -> vector<5x8xf32>
    %c0_138 = arith.constant 0 : index
    %c16_139 = arith.constant 16 : index
    %286 = vector.load %arg26[%c0_138, %c16_139] : memref<5x32xf32, #tpu.memory_space<vmem>>, vector<5x8xf32>
    tpu.vector_store %arg26[%c0_138, %c16_139], %285 {strides = array<i32>} : memref<5x32xf32, #tpu.memory_space<vmem>>, vector<5x8xf32>,
    %287 = vector.extract_strided_slice %232 {offsets = [0, 24], sizes = [5, 8], strides = [1, 1]} : vector<5x96xf32> to vector<5x8xf32>
    %288 = vector.extract_strided_slice %232 {offsets = [0, 56], sizes = [5, 8], strides = [1, 1]} : vector<5x96xf32> to vector<5x8xf32>
    %289 = vector.extract_strided_slice %232 {offsets = [0, 88], sizes = [5, 8], strides = [1, 1]} : vector<5x96xf32> to vector<5x8xf32>
    %cst_140 = arith.constant dense<0.000000e+00> : vector<5x5xf32>
    %290 = tpu.matmul %287, %288, %cst_140 {dimension_numbers = #tpu.dot_dimension_numbers<[1], [1], [0], [0], [0, 0, 1, 0], [], []>} : vector<5x8xf32>, vector<5x8xf32>, vector<5x5xf32> -> vector<5x5xf32>
    %cst_141 = arith.constant 0.353553385 : f32
    %291 = vector.broadcast %cst_141 : f32 to vector<5x5xf32>
    %292 = arith.mulf %290, %291 : vector<5x5xf32>
    %cst_142 = arith.constant dense<0xFF800000> : vector<5xf32>
    %293 = vector.multi_reduction <maximumf>, %292, %cst_142 [1] : vector<5x5xf32> to vector<5xf32>
    %294 = vector.shape_cast %293 : vector<5xf32> to vector<5x1xf32>
    %295 = vector.broadcast %294 : vector<5x1xf32> to vector<5x5xf32>
    %296 = arith.subf %292, %295 : vector<5x5xf32>
    %297 = math.exp %296 : vector<5x5xf32>
    %cst_143 = arith.constant dense<0.000000e+00> : vector<5xf32>
    %298 = vector.multi_reduction <add>, %297, %cst_143 [1] : vector<5x5xf32> to vector<5xf32>
    %299 = vector.shape_cast %298 : vector<5xf32> to vector<5x1xf32>
    %300 = tpu.reciprocal %299 {approx = true} : vector<5x1xf32> -> vector<5x1xf32>
    %301 = vector.broadcast %300 : vector<5x1xf32> to vector<5x5xf32>
    %302 = arith.mulf %297, %301 : vector<5x5xf32>
    %cst_144 = arith.constant dense<0.000000e+00> : vector<5x8xf32>
    %303 = tpu.matmul %302, %289, %cst_144 {dimension_numbers = #tpu.dot_dimension_numbers<[1], [0], [0], [1], [0, 0, 1, 1], [], []>} : vector<5x5xf32>, vector<5x8xf32>, vector<5x8xf32> -> vector<5x8xf32>
    %c0_145 = arith.constant 0 : index
    %c24_146 = arith.constant 24 : index
    %304 = vector.load %arg26[%c0_145, %c24_146] : memref<5x32xf32, #tpu.memory_space<vmem>>, vector<5x8xf32>
    tpu.vector_store %arg26[%c0_145, %c24_146], %303 {strides = array<i32>} : memref<5x32xf32, #tpu.memory_space<vmem>>, vector<5x8xf32>,
    %c0_147 = arith.constant 0 : index
    %c0_148 = arith.constant 0 : index
    %305 = vector.load %arg26[%c0_147, %c0_148] : memref<5x32xf32, #tpu.memory_space<vmem>>, vector<5x32xf32>
    %c1_149 = arith.constant 1 : index
    %c0_150 = arith.constant 0 : index
    %c0_151 = arith.constant 0 : index
    %306 = vector.load %arg11[%c1_149, %c0_150, %c0_151] : memref<2x32x32xf32, #tpu.memory_space<vmem>>, vector<1x32x32xf32>
    %307 = vector.shape_cast %306 : vector<1x32x32xf32> to vector<32x32xf32>
    %cst_152 = arith.constant dense<0.000000e+00> : vector<5x32xf32>
    %308 = tpu.matmul %305, %307, %cst_152 {dimension_numbers = #tpu.dot_dimension_numbers<[1], [0], [0], [1], [0, 0, 1, 1], [], []>} : vector<5x32xf32>, vector<32x32xf32>, vector<5x32xf32> -> vector<5x32xf32>
    %c1_153 = arith.constant 1 : index
    %c0_154 = arith.constant 0 : index
    %c0_155 = arith.constant 0 : index
    %309 = vector.load %arg12[%c1_153, %c0_154, %c0_155] : memref<2x1x32xf32, #tpu.memory_space<vmem>>, vector<1x1x32xf32>
    %310 = vector.shape_cast %309 : vector<1x1x32xf32> to vector<1x32xf32>
    %311 = vector.broadcast %310 : vector<1x32xf32> to vector<5x32xf32>
    %312 = arith.addf %308, %311 : vector<5x32xf32>
    %313 = arith.addf %199, %312 : vector<5x32xf32>
    %c1_156 = arith.constant 1 : index
    %c0_157 = arith.constant 0 : index
    %c0_158 = arith.constant 0 : index
    %314 = vector.load %arg13[%c1_156, %c0_157, %c0_158] : memref<2x1x32xf32, #tpu.memory_space<vmem>>, vector<1x1x32xf32>
    %315 = vector.shape_cast %314 : vector<1x1x32xf32> to vector<1x32xf32>
    %c1_159 = arith.constant 1 : index
    %c0_160 = arith.constant 0 : index
    %c0_161 = arith.constant 0 : index
    %316 = vector.load %arg14[%c1_159, %c0_160, %c0_161] : memref<2x1x32xf32, #tpu.memory_space<vmem>>, vector<1x1x32xf32>
    %317 = vector.shape_cast %316 : vector<1x1x32xf32> to vector<1x32xf32>
    %cst_162 = arith.constant dense<0.000000e+00> : vector<5xf32>
    %318 = vector.multi_reduction <add>, %313, %cst_162 [1] : vector<5x32xf32> to vector<5xf32>
    %319 = vector.shape_cast %318 : vector<5xf32> to vector<5x1xf32>
    %cst_163 = arith.constant 3.200000e+01 : f32
    %320 = vector.broadcast %cst_163 : f32 to vector<5x1xf32>
    %321 = arith.divf %319, %320 : vector<5x1xf32>
    %322 = vector.broadcast %321 : vector<5x1xf32> to vector<5x32xf32>
    %323 = arith.subf %313, %322 : vector<5x32xf32>
    %324 = arith.mulf %323, %323 : vector<5x32xf32>
    %cst_164 = arith.constant dense<0.000000e+00> : vector<5xf32>
    %325 = vector.multi_reduction <add>, %324, %cst_164 [1] : vector<5x32xf32> to vector<5xf32>
    %326 = vector.shape_cast %325 : vector<5xf32> to vector<5x1xf32>
    %cst_165 = arith.constant 3.200000e+01 : f32
    %327 = vector.broadcast %cst_165 : f32 to vector<5x1xf32>
    %328 = arith.divf %326, %327 : vector<5x1xf32>
    %329 = vector.broadcast %321 : vector<5x1xf32> to vector<5x32xf32>
    %330 = arith.subf %313, %329 : vector<5x32xf32>
    %cst_166 = arith.constant 9.99999974E-6 : f32
    %331 = vector.broadcast %cst_166 : f32 to vector<5x1xf32>
    %332 = arith.addf %328, %331 : vector<5x1xf32>
    %333 = math.rsqrt %332 : vector<5x1xf32>
    %334 = vector.broadcast %333 : vector<5x1xf32> to vector<5x32xf32>
    %335 = arith.mulf %330, %334 : vector<5x32xf32>
    %336 = vector.broadcast %315 : vector<1x32xf32> to vector<5x32xf32>
    %337 = arith.mulf %335, %336 : vector<5x32xf32>
    %338 = vector.broadcast %317 : vector<1x32xf32> to vector<5x32xf32>
    %339 = arith.addf %337, %338 : vector<5x32xf32>
    %c1_167 = arith.constant 1 : index
    %c0_168 = arith.constant 0 : index
    %c0_169 = arith.constant 0 : index
    %340 = vector.load %arg15[%c1_167, %c0_168, %c0_169] : memref<2x32x128xf32, #tpu.memory_space<vmem>>, vector<1x32x128xf32>
    %341 = vector.shape_cast %340 : vector<1x32x128xf32> to vector<32x128xf32>
    %cst_170 = arith.constant dense<0.000000e+00> : vector<5x128xf32>
    %342 = tpu.matmul %339, %341, %cst_170 {dimension_numbers = #tpu.dot_dimension_numbers<[1], [0], [0], [1], [0, 0, 1, 1], [], []>} : vector<5x32xf32>, vector<32x128xf32>, vector<5x128xf32> -> vector<5x128xf32>
    %c1_171 = arith.constant 1 : index
    %c0_172 = arith.constant 0 : index
    %c0_173 = arith.constant 0 : index
    %343 = vector.load %arg16[%c1_171, %c0_172, %c0_173] : memref<2x1x128xf32, #tpu.memory_space<vmem>>, vector<1x1x128xf32>
    %344 = vector.shape_cast %343 : vector<1x1x128xf32> to vector<1x128xf32>
    %345 = vector.broadcast %344 : vector<1x128xf32> to vector<5x128xf32>
    %346 = arith.addf %342, %345 : vector<5x128xf32>
    %cst_174 = arith.constant 1.702000e+00 : f32
    %347 = vector.broadcast %cst_174 : f32 to vector<5x128xf32>
    %348 = arith.mulf %347, %346 : vector<5x128xf32>
    %349 = arith.negf %348 : vector<5x128xf32>
    %350 = math.exp %349 : vector<5x128xf32>
    %cst_175 = arith.constant 1.000000e+00 : f32
    %351 = vector.broadcast %cst_175 : f32 to vector<5x128xf32>
    %352 = arith.addf %351, %350 : vector<5x128xf32>
    %353 = arith.divf %351, %352 : vector<5x128xf32>
    %354 = arith.mulf %346, %353 : vector<5x128xf32>
    %c1_176 = arith.constant 1 : index
    %c0_177 = arith.constant 0 : index
    %c0_178 = arith.constant 0 : index
    %355 = vector.load %arg17[%c1_176, %c0_177, %c0_178] : memref<2x128x32xf32, #tpu.memory_space<vmem>>, vector<1x128x32xf32>
    %356 = vector.shape_cast %355 : vector<1x128x32xf32> to vector<128x32xf32>
    %cst_179 = arith.constant dense<0.000000e+00> : vector<5x32xf32>
    %357 = tpu.matmul %354, %356, %cst_179 {dimension_numbers = #tpu.dot_dimension_numbers<[1], [0], [0], [1], [0, 0, 1, 1], [], []>} : vector<5x128xf32>, vector<128x32xf32>, vector<5x32xf32> -> vector<5x32xf32>
    %c1_180 = arith.constant 1 : index
    %c0_181 = arith.constant 0 : index
    %c0_182 = arith.constant 0 : index
    %358 = vector.load %arg18[%c1_180, %c0_181, %c0_182] : memref<2x1x32xf32, #tpu.memory_space<vmem>>, vector<1x1x32xf32>
    %359 = vector.shape_cast %358 : vector<1x1x32xf32> to vector<1x32xf32>
    %360 = vector.broadcast %359 : vector<1x32xf32> to vector<5x32xf32>
    %361 = arith.addf %357, %360 : vector<5x32xf32>
    %362 = arith.addf %313, %361 : vector<5x32xf32>
    %363 = vector.extract_strided_slice %362 {offsets = [0, 0], sizes = [1, 32], strides = [1, 1]} : vector<5x32xf32> to vector<1x32xf32>
    %364 = vector.shape_cast %363 : vector<1x32xf32> to vector<1x1x32xf32>
    %c0_183 = arith.constant 0 : index
    %c0_184 = arith.constant 0 : index
    %c0_185 = arith.constant 0 : index
    %365 = vector.load %arg23[%c0_183, %c0_184, %c0_185] : memref<1x1x32xf32, #tpu.memory_space<vmem>>, vector<1x1x32xf32>
    tpu.vector_store %arg23[%c0_183, %c0_184, %c0_185], %364 {strides = array<i32>} : memref<1x1x32xf32, #tpu.memory_space<vmem>>, vector<1x1x32xf32>,
    %366 = vector.extract_strided_slice %362 {offsets = [1, 0], sizes = [4, 32], strides = [1, 1]} : vector<5x32xf32> to vector<4x32xf32>
    %cst_186 = arith.constant dense<0.000000e+00> : vector<32xf32>
    %367 = vector.multi_reduction <add>, %366, %cst_186 [0] : vector<4x32xf32> to vector<32xf32>
    %368 = vector.shape_cast %367 : vector<32xf32> to vector<1x32xf32>
    %cst_187 = arith.constant 4.000000e+00 : f32
    %369 = vector.broadcast %cst_187 : f32 to vector<1x32xf32>
    %370 = arith.divf %368, %369 : vector<1x32xf32>
    %371 = vector.shape_cast %370 : vector<1x32xf32> to vector<1x1x32xf32>
    %c0_188 = arith.constant 0 : index
    %c0_189 = arith.constant 0 : index
    %c0_190 = arith.constant 0 : index
    %372 = vector.load %arg24[%c0_188, %c0_189, %c0_190] : memref<1x1x32xf32, #tpu.memory_space<vmem>>, vector<1x1x32xf32>
    tpu.vector_store %arg24[%c0_188, %c0_189, %c0_190], %371 {strides = array<i32>} : memref<1x1x32xf32, #tpu.memory_space<vmem>>, vector<1x1x32xf32>,
    %373 = vector.extract_strided_slice %362 {offsets = [0, 0], sizes = [1, 32], strides = [1, 1]} : vector<5x32xf32> to vector<1x32xf32>
    %c0_191 = arith.constant 0 : index
    %c0_192 = arith.constant 0 : index
    %374 = vector.load %arg19[%c0_191, %c0_192] : memref<1x32xf32, #tpu.memory_space<vmem>>, vector<1x32xf32>
    %c0_193 = arith.constant 0 : index
    %c0_194 = arith.constant 0 : index
    %375 = vector.load %arg20[%c0_193, %c0_194] : memref<1x32xf32, #tpu.memory_space<vmem>>, vector<1x32xf32>
    %cst_195 = arith.constant dense<0.000000e+00> : vector<1xf32>
    %376 = vector.multi_reduction <add>, %373, %cst_195 [1] : vector<1x32xf32> to vector<1xf32>
    %377 = vector.shape_cast %376 : vector<1xf32> to vector<1x1xf32>
    %cst_196 = arith.constant 3.200000e+01 : f32
    %378 = vector.broadcast %cst_196 : f32 to vector<1x1xf32>
    %379 = arith.divf %377, %378 : vector<1x1xf32>
    %380 = vector.broadcast %379 : vector<1x1xf32> to vector<1x32xf32>
    %381 = arith.subf %373, %380 : vector<1x32xf32>
    %382 = arith.mulf %381, %381 : vector<1x32xf32>
    %cst_197 = arith.constant dense<0.000000e+00> : vector<1xf32>
    %383 = vector.multi_reduction <add>, %382, %cst_197 [1] : vector<1x32xf32> to vector<1xf32>
    %384 = vector.shape_cast %383 : vector<1xf32> to vector<1x1xf32>
    %cst_198 = arith.constant 3.200000e+01 : f32
    %385 = vector.broadcast %cst_198 : f32 to vector<1x1xf32>
    %386 = arith.divf %384, %385 : vector<1x1xf32>
    %387 = vector.broadcast %379 : vector<1x1xf32> to vector<1x32xf32>
    %388 = arith.subf %373, %387 : vector<1x32xf32>
    %cst_199 = arith.constant 9.99999974E-6 : f32
    %389 = vector.broadcast %cst_199 : f32 to vector<1x1xf32>
    %390 = arith.addf %386, %389 : vector<1x1xf32>
    %391 = math.rsqrt %390 : vector<1x1xf32>
    %392 = vector.broadcast %391 : vector<1x1xf32> to vector<1x32xf32>
    %393 = arith.mulf %388, %392 : vector<1x32xf32>
    %394 = arith.mulf %393, %374 : vector<1x32xf32>
    %395 = arith.addf %394, %375 : vector<1x32xf32>
    %c0_200 = arith.constant 0 : index
    %c0_201 = arith.constant 0 : index
    %396 = vector.load %arg21[%c0_200, %c0_201] : memref<32x16xf32, #tpu.memory_space<vmem>>, vector<32x16xf32>
    %cst_202 = arith.constant dense<0.000000e+00> : vector<1x16xf32>
    %397 = tpu.matmul %395, %396, %cst_202 {dimension_numbers = #tpu.dot_dimension_numbers<[1], [0], [0], [1], [0, 0, 1, 1], [], []>} : vector<1x32xf32>, vector<32x16xf32>, vector<1x16xf32> -> vector<1x16xf32>
    %398 = vector.shape_cast %397 : vector<1x16xf32> to vector<1x1x16xf32>
    %c0_203 = arith.constant 0 : index
    %c0_204 = arith.constant 0 : index
    %c0_205 = arith.constant 0 : index
    %399 = vector.load %arg22[%c0_203, %c0_204, %c0_205] : memref<1x1x16xf32, #tpu.memory_space<vmem>>, vector<1x1x16xf32>
    tpu.vector_store %arg22[%c0_203, %c0_204, %c0_205], %398 {strides = array<i32>} : memref<1x1x16xf32, #tpu.memory_space<vmem>>, vector<1x1x16xf32>,
    return
  }
  func.func @transform_0(%arg0: i32) -> (i32, i32, i32) {
    %c0_i32 = arith.constant 0 : i32
    %c0_i32_0 = arith.constant 0 : i32
    %c0_i32_1 = arith.constant 0 : i32
    return %arg0, %c0_i32, %c0_i32_0 : i32, i32, i32
  }
  func.func @transform_1(%arg0: i32) -> (i32, i32) {
    %c0_i32 = arith.constant 0 : i32
    %c0_i32_0 = arith.constant 0 : i32
    %c0_i32_1 = arith.constant 0 : i32
    return %c0_i32, %c0_i32_0 : i32, i32
  }
  func.func @transform_2(%arg0: i32) -> (i32, i32) {
    %c0_i32 = arith.constant 0 : i32
    %c0_i32_0 = arith.constant 0 : i32
    %c0_i32_1 = arith.constant 0 : i32
    return %c0_i32, %c0_i32_0 : i32, i32
  }
  func.func @transform_3(%arg0: i32) -> (i32, i32) {
    %c0_i32 = arith.constant 0 : i32
    %c0_i32_0 = arith.constant 0 : i32
    %c0_i32_1 = arith.constant 0 : i32
    return %c0_i32, %c0_i32_0 : i32, i32
  }
  func.func @transform_4(%arg0: i32) -> (i32, i32) {
    %c0_i32 = arith.constant 0 : i32
    %c0_i32_0 = arith.constant 0 : i32
    %c0_i32_1 = arith.constant 0 : i32
    return %c0_i32, %c0_i32_0 : i32, i32
  }
  func.func @transform_5(%arg0: i32) -> (i32, i32) {
    %c0_i32 = arith.constant 0 : i32
    %c0_i32_0 = arith.constant 0 : i32
    %c0_i32_1 = arith.constant 0 : i32
    return %c0_i32, %c0_i32_0 : i32, i32
  }
  func.func @transform_6(%arg0: i32) -> (i32, i32, i32) {
    %c0_i32 = arith.constant 0 : i32
    %c0_i32_0 = arith.constant 0 : i32
    %c0_i32_1 = arith.constant 0 : i32
    %c0_i32_2 = arith.constant 0 : i32
    return %c0_i32, %c0_i32_0, %c0_i32_1 : i32, i32, i32
  }
  func.func @transform_7(%arg0: i32) -> (i32, i32, i32) {
    %c0_i32 = arith.constant 0 : i32
    %c0_i32_0 = arith.constant 0 : i32
    %c0_i32_1 = arith.constant 0 : i32
    %c0_i32_2 = arith.constant 0 : i32
    return %c0_i32, %c0_i32_0, %c0_i32_1 : i32, i32, i32
  }
  func.func @transform_8(%arg0: i32) -> (i32, i32, i32) {
    %c0_i32 = arith.constant 0 : i32
    %c0_i32_0 = arith.constant 0 : i32
    %c0_i32_1 = arith.constant 0 : i32
    %c0_i32_2 = arith.constant 0 : i32
    return %c0_i32, %c0_i32_0, %c0_i32_1 : i32, i32, i32
  }
  func.func @transform_9(%arg0: i32) -> (i32, i32, i32) {
    %c0_i32 = arith.constant 0 : i32
    %c0_i32_0 = arith.constant 0 : i32
    %c0_i32_1 = arith.constant 0 : i32
    %c0_i32_2 = arith.constant 0 : i32
    return %c0_i32, %c0_i32_0, %c0_i32_1 : i32, i32, i32
  }
  func.func @transform_10(%arg0: i32) -> (i32, i32, i32) {
    %c0_i32 = arith.constant 0 : i32
    %c0_i32_0 = arith.constant 0 : i32
    %c0_i32_1 = arith.constant 0 : i32
    %c0_i32_2 = arith.constant 0 : i32
    return %c0_i32, %c0_i32_0, %c0_i32_1 : i32, i32, i32
  }
  func.func @transform_11(%arg0: i32) -> (i32, i32, i32) {
    %c0_i32 = arith.constant 0 : i32
    %c0_i32_0 = arith.constant 0 : i32
    %c0_i32_1 = arith.constant 0 : i32
    %c0_i32_2 = arith.constant 0 : i32
    return %c0_i32, %c0_i32_0, %c0_i32_1 : i32, i32, i32
  }
  func.func @transform_12(%arg0: i32) -> (i32, i32, i32) {
    %c0_i32 = arith.constant 0 : i32
    %c0_i32_0 = arith.constant 0 : i32
    %c0_i32_1 = arith.constant 0 : i32
    %c0_i32_2 = arith.constant 0 : i32
    return %c0_i32, %c0_i32_0, %c0_i32_1 : i32, i32, i32
  }
  func.func @transform_13(%arg0: i32) -> (i32, i32, i32) {
    %c0_i32 = arith.constant 0 : i32
    %c0_i32_0 = arith.constant 0 : i32
    %c0_i32_1 = arith.constant 0 : i32
    %c0_i32_2 = arith.constant 0 : i32
    return %c0_i32, %c0_i32_0, %c0_i32_1 : i32, i32, i32
  }
  func.func @transform_14(%arg0: i32) -> (i32, i32, i32) {
    %c0_i32 = arith.constant 0 : i32
    %c0_i32_0 = arith.constant 0 : i32
    %c0_i32_1 = arith.constant 0 : i32
    %c0_i32_2 = arith.constant 0 : i32
    return %c0_i32, %c0_i32_0, %c0_i32_1 : i32, i32, i32
  }
  func.func @transform_15(%arg0: i32) -> (i32, i32, i32) {
    %c0_i32 = arith.constant 0 : i32
    %c0_i32_0 = arith.constant 0 : i32
    %c0_i32_1 = arith.constant 0 : i32
    %c0_i32_2 = arith.constant 0 : i32
    return %c0_i32, %c0_i32_0, %c0_i32_1 : i32, i32, i32
  }
  func.func @transform_16(%arg0: i32) -> (i32, i32, i32) {
    %c0_i32 = arith.constant 0 : i32
    %c0_i32_0 = arith.constant 0 : i32
    %c0_i32_1 = arith.constant 0 : i32
    %c0_i32_2 = arith.constant 0 : i32
    return %c0_i32, %c0_i32_0, %c0_i32_1 : i32, i32, i32
  }
  func.func @transform_17(%arg0: i32) -> (i32, i32, i32) {
    %c0_i32 = arith.constant 0 : i32
    %c0_i32_0 = arith.constant 0 : i32
    %c0_i32_1 = arith.constant 0 : i32
    %c0_i32_2 = arith.constant 0 : i32
    return %c0_i32, %c0_i32_0, %c0_i32_1 : i32, i32, i32
  }
  func.func @transform_18(%arg0: i32) -> (i32, i32) {
    %c0_i32 = arith.constant 0 : i32
    %c0_i32_0 = arith.constant 0 : i32
    %c0_i32_1 = arith.constant 0 : i32
    return %c0_i32, %c0_i32_0 : i32, i32
  }
  func.func @transform_19(%arg0: i32) -> (i32, i32) {
    %c0_i32 = arith.constant 0 : i32
    %c0_i32_0 = arith.constant 0 : i32
    %c0_i32_1 = arith.constant 0 : i32
    return %c0_i32, %c0_i32_0 : i32, i32
  }
  func.func @transform_20(%arg0: i32) -> (i32, i32) {
    %c0_i32 = arith.constant 0 : i32
    %c0_i32_0 = arith.constant 0 : i32
    %c0_i32_1 = arith.constant 0 : i32
    return %c0_i32, %c0_i32_0 : i32, i32
  }
  func.func @transform_21(%arg0: i32) -> (i32, i32, i32) {
    %c0_i32 = arith.constant 0 : i32
    %c0_i32_0 = arith.constant 0 : i32
    %c0_i32_1 = arith.constant 0 : i32
    return %arg0, %c0_i32, %c0_i32_0 : i32, i32, i32
  }
  func.func @transform_22(%arg0: i32) -> (i32, i32, i32) {
    %c0_i32 = arith.constant 0 : i32
    %c0_i32_0 = arith.constant 0 : i32
    %c0_i32_1 = arith.constant 0 : i32
    return %arg0, %c0_i32, %c0_i32_0 : i32, i32, i32
  }
  func.func @transform_23(%arg0: i32) -> (i32, i32, i32) {
    %c0_i32 = arith.constant 0 : i32
    %c0_i32_0 = arith.constant 0 : i32
    %c0_i32_1 = arith.constant 0 : i32
    return %arg0, %c0_i32, %c0_i32_0 : i32, i32, i32
  }
}

</mosaic_0001>

<bundles_post_ra>
// kernel: tpu_custom_call.1
= control target key start
LH: loop header
LB: loop body
LE: loop exit
PB: predicated region body
PF: predicated region fallthrough
CT: control target
= control target key end

     0   :  { %s5045_s0 = inlined_call_operand.vmem [shape: f32[2,4,192], index: 0, kind: input, shape index: {}]   ;;  %s5046_s1 = inlined_call_operand.vmem [shape: f32[192,32], index: 1, kind: input, shape index: {}]   ;;  %s5047_s2 = inlined_call_operand.vmem [shape: f32[1,32], index: 2, kind: input, shape index: {}]   ;;  %s5048_s3 = inlined_call_operand.vmem [shape: f32[5,32], index: 3, kind: input, shape index: {}]   ;;  %s5049_s4 = inlined_call_operand.vmem [shape: f32[1,32], index: 4, kind: input, shape index: {}]   ;;  %s5050_s5 = inlined_call_operand.vmem [shape: f32[1,32], index: 5, kind: input, shape index: {}]   ;;  %s5051_s6 = inlined_call_operand.vmem [shape: f32[2,1,32], index: 6, kind: input, shape index: {}]   ;;  %s5052_s7 = inlined_call_operand.vmem [shape: f32[2,1,32], index: 7, kind: input, shape index: {}]   ;;  %s5053_s8 = inlined_call_operand.vmem [shape: f32[2,32,96], index: 8, kind: input, shape index: {}]   ;;  %s5054_s9 = inlined_call_operand.vmem [shape: f32[2,1,96], index: 9, kind: input, shape index: {}]   ;;  %s5055_s10 = inlined_call_operand.vmem [shape: f32[2,32,32], index: 10, kind: input, shape index: {}]   ;;  %s5056_s11 = inlined_call_operand.vmem [shape: f32[2,1,32], index: 11, kind: input, shape index: {}]   ;;  %s5057_s12 = inlined_call_operand.vmem [shape: f32[2,1,32], index: 12, kind: input, shape index: {}]   ;;  %s5058_s13 = inlined_call_operand.vmem [shape: f32[2,1,32], index: 13, kind: input, shape index: {}]   ;;  %s5059_s14 = inlined_call_operand.vmem [shape: f32[2,32,128], index: 14, kind: input, shape index: {}]   ;;  %s5060_s15 = inlined_call_operand.vmem [shape: f32[2,1,128], index: 15, kind: input, shape index: {}]   ;;  %s5061_s16 = inlined_call_operand.vmem [shape: f32[2,128,32], index: 16, kind: input, shape index: {}]   ;;  %s5062_s17 = inlined_call_operand.vmem [shape: f32[2,1,32], index: 17, kind: input, shape index: {}]   ;;  %s5063_s18 = inlined_call_operand.vmem [shape: f32[1,32], index: 18, kind: input, shape index: {}]   ;;  %s5064_s19 = inlined_call_operand.vmem [shape: f32[1,32], index: 19, kind: input, shape index: {}]   ;;  %s5065_s20 = inlined_call_operand.vmem [shape: f32[32,16], index: 20, kind: input, shape index: {}]   ;;  %s5066_s21 = inlined_call_operand.hbm [shape: f32[2,1,16], index: 21, kind: output, shape index: {0}]   ;;  %s5067_s22 = inlined_call_operand.hbm [shape: f32[2,1,32], index: 22, kind: output, shape index: {1}]   ;;  %s5068_s23 = inlined_call_operand.hbm [shape: f32[2,1,32], index: 23, kind: output, shape index: {2}]  }
   0x1   :  { %5097 = sst [smem:[#allocation17_spill]] %s5045_s0 }
   0x2   :  { %5098 = sst [smem:[#allocation18_spill]] %s5046_s1 }
   0x3   :  { %5099 = sst [smem:[#allocation19_spill]] %s5047_s2 }
   0x4   :  { %5100 = sst [smem:[#allocation20_spill]] %s5048_s3 }
   0x5   :  { %5101 = sst [smem:[#allocation21_spill]] %s5049_s4 }
   0x6   :  { %5102 = sst [smem:[#allocation22_spill]] %s5050_s5 }
   0x7   :  { %5103 = sst [smem:[#allocation23_spill]] %s5051_s6 }
   0x8   :  { %5104 = sst [smem:[#allocation24_spill]] %s5052_s7 }
   0x9   :  { %5105 = sst [smem:[#allocation25_spill]] %s5066_s21 }
   0xa   :  { %5106 = sst [smem:[#allocation26_spill]] %s5067_s22 }
   0xb   :  { %5107 = sst [smem:[#allocation27_spill]] %s5068_s23 }
   0xc   :  { %29 = vsyncpa [#allocation5], 0 }
   0xd   :  { %31 = vsyncpa [#allocation5 + $0x1], 0 }
   0xe   :  { %32 = vsyncpa [#allocation7], 0 }
   0xf   :  { %34 = vsyncpa [#allocation7 + $0x1], 0  ;;  %s4291_s4 = smov 0   ;;  %s4293_s30 = smov 0  }
  0x10   :  { %s4295_s24 = smov 0   ;;  %s4297_s25 = smov 0  }
  0x11 LB: > { %5108 = sst [smem:[#allocation11_spill]] %s4137_s4  ;;  %s4312_s5 = sadd.s32 4294967295, %s4149_s25   ;;  %s4149_s25 = sphi %s4297_s25, %s5143_s25   ;;  %s4145_s24 = sphi %s4295_s24, %s5145_s24   ;;  %s4141_s30 = sphi %s4293_s30, %s5147_s30   ;;  %s4137_s4 = sphi %s4291_s4, %s5146_s4  }
  0x12   : > { %5109 = sst [smem:[#allocation12_spill]] %s4145_s24  ;;  %s5072_s1 = sadd.s32 4294967294, %s4149_s25  }
  0x13   : > { %5110 = sst [smem:[#allocation13_spill]] %s4149_s25  ;;  %s4316_s26 = sadd.s32 1, %s4149_s25  }
  0x14   : > { %5111 = sst [smem:[#allocation14_spill]] %s4316_s26  ;;  %s493_s2 = sadd.s32 1, %s4145_s24 }
  0x15   : > { %s490_s6 = ssub.s32 %s4149_s25, %s4316_s26  ;;  %p503_p0 = scmp.ne.s32.totalorder %s4145_s24, %s4141_s30 }
  0x16   : > { %p491_p1 = scmp.eq.s32.totalorder %s490_s6, 0  ;;  %p504_p2 = scmp.eq.s32.totalorder %s4312_s5, 1 }
  0x17   : > { %p509_p3 = scmp.ne.s32.totalorder %s4141_s30, %s4137_s4  ;;  %p510_p4 = scmp.eq.s32.totalorder %s5072_s1, 1 }
  0x18   : > { %s4329_s27 = scalar_select %p491_p1, %s4145_s24, %s493_s2  }
  0x19   : > { %p4331_p5 = por %p504_p2, %p503_p0  ;;  %p4335_p6 = por %p510_p4, %p509_p3 }
  0x1a   : > { %5112 = sst [smem:[#allocation15_spill]] %s4329_s27  ;;  %p3349_p7 = scmp.ge.s32.totalorder %s4149_s25, 1 }
  0x1b   : > { %s5114_s28 = scalar_select %p4335_p6, 1, 0 }
  0x1c   : > { %p648_p8 = scmp.lt.s32.totalorder %s4149_s25, 3 }
  0x1d   : > { %5115 = sst [smem:[#allocation16_spill]] %s5114_s28 }
  0x1e   : > { %p649_p9 = pnand %p3349_p7, %p648_p8 }
  0x1f   : > { %s5116_s0 = sld [smem:[#allocation18_spill]] (!%p649_p9)  ;;  %p719_p10 = scmp.lt.s32.totalorder (!%p649_p9), %s4312_s5, 1  ;;  %v4151_v3 = vmov (!%p649_p9), 0.0|0.0   ;;  %vm759_vm0 = vcmask (!%p649_p9), 523264   ;;  %vm752_vm1 = vcmask (!%p649_p9), 253952   ;;  %vm832_vm2 = vcmask (!%p649_p9), 257024  }
  0x20   : > { %652 = sbr.rel (%p649_p9) target bundleno = 8819 (0x2273), region = 104  ;;  %3782 = vmatprep.subr.bf16.mxu0 (!%p649_p9), %v4151_v3  ;;  %3818 = vmatprep.subr.bf16.mxu1 (!%p649_p9), %v4151_v3  ;;  %s5117_s24 = sld [smem:[#allocation17_spill]] (!%p649_p9)  ;;  %vm837_vm3 = vcmask (!%p649_p9), 258048   ;;  %vm4152_vm4 = vmmov (!%p649_p9), 0   ;;  %vm906_vm5 = vcmask (!%p649_p9), 261120   ;;  %vm983_vm6 = vcmask (!%p649_p9), 64512  }
  0x21   : > { %s5118_s2 = sld [smem:[#allocation20_spill]] (!%p649_p9)  ;;  %s5119_s1 = sld [smem:[#allocation19_spill]] (!%p649_p9)  ;;  %vm1059_vm7 = vcmask (!%p649_p9), 36864   ;;  %vm1077_vm8 = vcmask (!%p649_p9), 1044480   ;;  %vm1073_vm9 = vcmask (!%p649_p9), 39936   ;;  %vm1150_vm10 = vcmask (!%p649_p9), 61440  }
  0x22   : > { %s4155_s21 = smov (!%p649_p9), 88   ;;  %s4156_s22 = smov (!%p649_p9), 64   ;;  %vm1323_vm11 = vcmask (!%p649_p9), 127040   ;;  %vm1496_vm12 = vcmask (!%p649_p9), 192640   ;;  %vm1669_vm13 = vcmask (!%p649_p9), 258240  }
  0x23   : > { %s4157_s23 = smov (!%p649_p9), 120   ;;  %s5090_s25 = smov (!%p649_p9), 56  }
  0x24   : > { %s5089_s27 = smov (!%p649_p9), 112   ;;  %s5088_s3 = smov (!%p649_p9), 104  }
  0x25   : > { %v725_v0 = vld [vmem:[%s5116_s0] sm:$0xff] (!%p649_p9)  ;;  %v726_v1 = vld [vmem:[%s5116_s0 + $0x8] sm:$0xff] (!%p649_p9)  ;;  %v727_v2 = vld [vmem:[%s5116_s0 + $0x10] sm:$0xff] (!%p649_p9)  ;;  %s5085_s4 = smov (!%p649_p9), 40   ;;  %s5084_s28 = smov (!%p649_p9), 16  }
  0x26   : > { %v3783_v4 = vpack.c.bf16 (!%p649_p9), %v726_v1, %v725_v0  ;;  %v728_v5 = vld [vmem:[%s5116_s0 + $0x18] sm:$0xff] (!%p649_p9)  ;;  %v729_v7 = vld [vmem:[%s5116_s0 + $0x20] sm:$0xff] (!%p649_p9)  ;;  %v730_v8 = vld [vmem:[%s5116_s0 + $0x28] sm:$0xff] (!%p649_p9) }
  0x27   : > { %s720_s29 = scalar_select %p719_p10, %s4312_s5, 1  ;;  %v3786_v6 = vpack.c.bf16 %v728_v5, %v727_v2  ;;  %v3789_v9 = vpack.c.bf16 %v730_v8, %v729_v7  ;;  %v731_v10 = vld [vmem:[%s5116_s0 + $0x30] sm:$0xff]  ;;  %v732_v11 = vld [vmem:[%s5116_s0 + $0x38] sm:$0xff]  ;;  %v749_v13 = vld [vmem:[%s5118_s2] sm:$0x1f] }
  0x28   : > { %3784 = vmatpush1.bf16.msra.mxu0 %v3783_v4  ;;  %v750_v14 = vld [vmem:[%s5119_s1] sm:$0x1]  ;;  %v3792_v17 = vpack.c.bf16 %v732_v11, %v731_v10  ;;  %v734_v19 = vld [vmem:[%s5116_s0 + $0x48] sm:$0xff]  ;;  %v735_v21 = vld [vmem:[%s5116_s0 + $0x50] sm:$0xff]  ;;  %v757_v42 = vrot.slane %v749_v13, 1  ;;  %v4153_v10 = vmov 0.0  }
  0x29   : > { %3785 = vmatprep.subr.bf16.mxu0 %v4151_v3  ;;  %s3453_s6 = sshll.u32 %s720_s29, 3  ;;  %v751_v16 = vadd.f32 %v750_v14, %v749_v13  ;;  %v733_v18 = vld [vmem:[%s5116_s0 + $0x40] sm:$0xff]  ;;  %v736_v22 = vld [vmem:[%s5116_s0 + $0x58] sm:$0xff]  ;;  %v738_v25 = vld [vmem:[%s5116_s0 + $0x68] sm:$0xff]  ;;  %s5121_s29 = sld [smem:[#allocation22_spill]]  ;;  %3563 = vmatprep.mubr.msk.f32.mxu1 %vm4152_vm4, %v4153_v10 }
  0x2a   : > { %s723_s26 = scalar_lea.vmem %s5117_s24, %s3453_s6  ;;  %v3795_v20 = vpack.c.bf16 %v734_v19, %v733_v18  ;;  %v3798_v23 = vpack.c.bf16 %v736_v22, %v735_v21  ;;  %v737_v24 = vld [vmem:[%s5116_s0 + $0x60] sm:$0xff]  ;;  %v739_v27 = vld [vmem:[%s5116_s0 + $0x70] sm:$0xff]  ;;  %v740_v28 = vld [vmem:[%s5116_s0 + $0x78] sm:$0xff]  ;;  %s5120_s24 = sld [smem:[#allocation21_spill]] }
  0x2b   : > { %v724_v12 = vld [vmem:[%s723_s26] sm:$0xff]  ;;  %753 = vst.msk [vmem:[#allocation2] sm:$0x1] %vm752_vm1, %v751_v16  ;;  %v3801_v26 = vpack.c.bf16 %v738_v25, %v737_v24  ;;  %v3804_v29 = vpack.c.bf16 %v740_v28, %v739_v27  ;;  %v742_v31 = vld [vmem:[%s5116_s0 + $0x88] sm:$0xff]  ;;  %v743_v33 = vld [vmem:[%s5116_s0 + $0x90] sm:$0xff]  ;;  %s5124_s2 = sld [smem:[#allocation24_spill]] }
  0x2c   : > { %3787 = vmatpush1.bf16.msra.mxu0 %v3786_v6  ;;  %v755_v15 = vcombine.high %v724_v12, %v724_v12  ;;  %v741_v30 = vld [vmem:[%s5116_s0 + $0x80] sm:$0xff]  ;;  %v744_v34 = vld [vmem:[%s5116_s0 + $0x98] sm:$0xff]  ;;  %v746_v37 = vld [vmem:[%s5116_s0 + $0xa8] sm:$0xff]  ;;  %s4154_s1 = smov 96   ;;  %s5091_s6 = smov 80  }
  0x2d   : > { %3788 = vmatprep.subr.bf16.mxu0 %v4151_v3  ;;  %v3807_v32 = vpack.c.bf16 %v742_v31, %v741_v30  ;;  %v3810_v35 = vpack.c.bf16 %v744_v34, %v743_v33  ;;  %v745_v36 = vld [vmem:[%s5116_s0 + $0xa0] sm:$0xff]  ;;  %v747_v39 = vld [vmem:[%s5116_s0 + $0xb0] sm:$0xff]  ;;  %v748_v40 = vld [vmem:[%s5116_s0 + $0xb8] sm:$0xff] }
  0x2e   : > { %3352 = vmatprep.mubr.msk.f32.mxu0 %vm759_vm0, %v755_v15  ;;  %v3813_v38 = vpack.c.bf16 %v746_v37, %v745_v36  ;;  %v3816_v41 = vpack.c.bf16 %v748_v40, %v747_v39  ;;  %v895_v5 = vld [vmem:[%s5053_s8] sm:$0xff]  ;;  %v896_v6 = vld [vmem:[%s5053_s8 + $0x8] sm:$0xff]  ;;  %v897_v7 = vld [vmem:[%s5053_s8 + $0x10] sm:$0xff] }
  0x2f   : > { %v3354_v59 = vld [vmem:[%s5121_s29] ss:$0 sm:$0xff]  ;;  %v3819_v8 = vpack.c.bf16 %v896_v6, %v895_v5  ;;  %s5083_s29 = smov 48  }
  0x30   : > { %3790 = vmatpush1.bf16.msra.mxu0 %v3789_v9  ;;  %v3353_v57 = vld [vmem:[%s5120_s24] ss:$0 sm:$0xff]  ;;  %v898_v9 = vld [vmem:[%s5053_s8 + $0x18] sm:$0xff]  ;;  %s5122_s24 = sld [smem:[#allocation23_spill]] }
  0x31   : > { %3791 = vmatprep.subr.bf16.mxu0 %v4151_v3  ;;  %3820 = vmatpush3.bf16.msra.mxu1 %v3819_v8  ;;  %v3822_v11 = vpack.c.bf16 %v898_v9, %v897_v7  ;;  %v3356_v18 = vld [vmem:[%s5124_s2] ss:$0 sm:$0xff] }
  0x32   : > { %3821 = vmatprep.subr.bf16.mxu1 %v4151_v3  ;;  %v3357_v21 = vld [vmem:[%s5054_s9] ss:$0 sm:$0xff] }
  0x34   : > { %3793 = vmatpush1.bf16.msra.mxu0 %v3792_v17 }
  0x35   : > { %3794 = vmatprep.subr.bf16.mxu0 %v4151_v3  ;;  %3823 = vmatpush3.bf16.msra.mxu1 %v3822_v11 }
  0x36   : > { %3566 = vmatprep.subr.mxu1 %v4153_v10  ;;  %s5123_s26 = smov %s5122_s24  ;;  %v3355_v16 = vld [vmem:[%s5122_s24] ss:$0 sm:$0xff]  ;;  %s5087_s24 = smov 72  }
  0x38   : > { %3796 = vmatpush1.bf16.msra.mxu0 %v3795_v20 }
  0x39   : > { %3797 = vmatprep.subr.bf16.mxu0 %v4151_v3 }
  0x3c   : > { %3799 = vmatpush1.bf16.msra.mxu0 %v3798_v23 }
  0x3d   : > { %3800 = vmatprep.subr.bf16.mxu0 %v4151_v3 }
  0x40   : > { %3802 = vmatpush1.bf16.msra.mxu0 %v3801_v26 }
  0x41   : > { %3803 = vmatprep.subr.bf16.mxu0 %v4151_v3 }
  0x44   : > { %3805 = vmatpush1.bf16.msra.mxu0 %v3804_v29 }
  0x45   : > { %3806 = vmatprep.subr.bf16.mxu0 %v4151_v3 }
  0x48   : > { %3808 = vmatpush1.bf16.msra.mxu0 %v3807_v32 }
  0x49   : > { %3809 = vmatprep.subr.bf16.mxu0 %v4151_v3 }
  0x4c   : > { %3811 = vmatpush1.bf16.msra.mxu0 %v3810_v35 }
  0x4d   : > { %3812 = vmatprep.subr.bf16.mxu0 %v4151_v3 }
  0x50   : > { %3814 = vmatpush1.bf16.msra.mxu0 %v3813_v38 }
  0x51   : > { %3815 = vmatprep.subr.bf16.mxu0 %v4151_v3 }
  0x54   : > { %3817 = vmatpush1.bf16.msra.mxu0 %v3816_v41 }
  0x55   : > { %3860 = vmatprep.subr.bf16.mxu0 %v4151_v3 }
  0x57   : > { %827 = vmatmul.mubr.f32.vlgmr.msra.gmra.mrb[0].mxu0 %v724_v12 }
  0x58   : > { %3671 = vmatprep.mubr.msk.f32.mxu0 %vm4152_vm4, %v4153_v10 }
 0x12a   : > { %v828_v43 = vpop.f32.mrb[0].mxu0 }
 0x12b   : > { %v829_v44 = vadd.f32 %v828_v43, %v757_v42  ;;  %v830_v45 = vpop.f32.mrb[1].mxu0 }
 0x12d   : > { %833 = vst.msk [vmem:[#allocation2 + $0x1] sm:$0xf] %vm832_vm2, %v829_v44 }
 0x134   : > { %v834_v46 = vld [vmem:[#allocation2] sm:$0x1f] }
 0x135   : > { %v838_v47 = vsel %vm837_vm3, %v834_v46, 0.0 }
 0x136   : > { %839 = vadd.xlane.f32.xlu0 %v838_v47 }
 0x1c3   : > { %v840_v48 = vpop.xlane.xlu0 %839 }
 0x1c4   : > { %v842_v49 = vmul.f32 0.03125, %v840_v48 }
 0x1c6   : > { %v843_v50 = vsub.f32 %v834_v46, %v842_v49 }
 0x1c8   : > { %v844_v51 = vmul.f32 %v843_v50, %v843_v50 }
 0x1ca   : > { %v845_v52 = vsel %vm837_vm3, %v844_v51, 0.0 }
 0x1cb   : > { %846 = vadd.xlane.f32.xlu0 %v845_v52 }
 0x258   : > { %v847_v53 = vpop.xlane.xlu0 %846 }
 0x259   : > { %v848_v54 = vmul.f32 0.03125, %v847_v53 }
 0x25b   : > { %v849_v55 = vadd.f32 1e-05, %v848_v54 }
 0x25d   : > { %3975 = vrsqrt.f32 %v849_v55 }
 0x267   : > { %v3976_v56 = vpop.eup %3975 }
 0x268   : > { %v851_v58 = vmul.f32 %v3976_v56, %v843_v50 }
 0x26a   : > { %v858_v60 = vmul.f32 %v3353_v57, %v851_v58 }
 0x26c   : > { %v4448_v61 = vadd.f32 %v3354_v59, %v858_v60 }
 0x26e   : > { %v868_v62 = vsel %vm837_vm3, %v4448_v61, 0.0 }
 0x26f   : > { %869 = vadd.xlane.f32.xlu1 %v868_v62 }
 0x2fc   : > { %v870_v63 = vpop.xlane.xlu1 %869 }
 0x2fd   : > { %v871_v0 = vmul.f32 0.03125, %v870_v63 }
 0x2ff   : > { %v872_v1 = vsub.f32 %v4448_v61, %v871_v0 }
 0x301   : > { %v873_v2 = vmul.f32 %v872_v1, %v872_v1 }
 0x303   : > { %v874_v4 = vsel %vm837_vm3, %v873_v2, 0.0 }
 0x304   : > { %875 = vadd.xlane.f32.xlu1 %v874_v4 }
 0x391   : > { %v876_v12 = vpop.xlane.xlu1 %875 }
 0x392   : > { %v877_v13 = vmul.f32 0.03125, %v876_v12 }
 0x394   : > { %v878_v14 = vadd.f32 1e-05, %v877_v13 }
 0x396   : > { %3977 = vrsqrt.f32 %v878_v14 }
 0x3a0   : > { %v3978_v15 = vpop.eup %3977 }
 0x3a1   : > { %v880_v17 = vmul.f32 %v3978_v15, %v872_v1 }
 0x3a3   : > { %v887_v19 = vmul.f32 %v3355_v16, %v880_v17 }
 0x3a5   : > { %v894_v20 = vadd.f32 %v3356_v18, %v887_v19 }
 0x3a7   : > { %3564 = vmatmul.mubr.msk.f32.vlgmr.msra.gmra.mrb[0].mxu1 %vm906_vm5, %v894_v20 }
 0x3a8   : > { %3568 = vmatprep.mubr.msk.f32.mxu1 %vm4152_vm4, %v4153_v10 }
 0x47a   : > { %v976_v22 = vpop.f32.mrb[0].mxu1 }
 0x47b   : > { %v4484_v23 = vadd.f32 %v3357_v21, %v976_v22  ;;  %v3565_v24 = vpop.f32.mrb[1].mxu1 }
 0x47d   : > { %981 = vrot.lane.b32.xlu0 %v4484_v23, %s4154_s1 }
 0x481   : > { %1154 = vrot.lane.b32.xlu0 %v4484_v23, %s4155_s21 }
 0x4ef   : > { %v982_v25 = vpop.permute.xlu0 %981 }
 0x4f0   : > { %3567 = vmatpush3.xpose.msk.msra.mxu1 %vm983_vm6, %v982_v25 }
 0x4f1   : > { %3571 = vmatprep.subr.mxu1 %v4153_v10 }
 0x4f3   : > { %3569 = vmatmul.mubr.msk.f32.vlgmr.msra.gmra.mrb[2].mxu1 %vm983_vm6, %v4484_v23  ;;  %v1155_v39 = vpop.permute.xlu0 %1154 }
 0x4f4   : > { %3573 = vmatprep.mubr.msk.f32.mxu1 %vm4152_vm4, %v4153_v10 }
 0x5c6   : > { %v1054_v26 = vpop.f32.mrb[2].mxu1 }
 0x5c7   : > { %v1058_v27 = vmul.f32 0.35355338, %v1054_v26  ;;  %v3570_v28 = vpop.f32.mrb[3].mxu1 }
 0x5c9   : > { %v1060_v29 = vsel %vm1059_vm7, %v1058_v27, -inf }
 0x5ca   : > { %1061 = vmax.xlane.f32.xlu1 %v1060_v29 }
 0x5db   : > { %1071 = vrot.lane.b32.xlu1 %v4484_v23, %s4156_s22 }
 0x657   : > { %v1062_v30 = vpop.xlane.xlu1 %1061 }
 0x658   : > { %v1063_v31 = vsub.f32 %v1058_v27, %v1062_v30 }
 0x65a   : > { %v1064_v32 = vmul.f32 1.442695, %v1063_v31  ;;  %v1672_v31 = vld [vmem:[%s5055_s10] sm:$0xff] }
 0x65b   : > { %v1072_v33 = vpop.permute.xlu1 %1071 }
 0x65c   : > { %3979 = vpow2.f32 %v1064_v32  ;;  %3572 = vmatpush3.msk.msra.mxu1 %vm1077_vm8, %v1072_v33  ;;  %v1673_v32 = vld [vmem:[%s5055_s10 + $0x8] sm:$0xff] }
 0x65d   : > { %3576 = vmatprep.subr.mxu1 %v4153_v10  ;;  %v3825_v33 = vpack.c.bf16 %v1673_v32, %v1672_v31 }
 0x666   : > { %v3980_v34 = vpop.eup %3979 }
 0x667   : > { %v1066_v35 = vsel %vm1059_vm7, %v3980_v34, 0.0 }
 0x668   : > { %1067 = vadd.xlane.f32.xlu1 %v1066_v35  ;;  %v1675_v35 = vld [vmem:[%s5055_s10 + $0x18] sm:$0xff] }
 0x679   : > { %1152 = vrot.lane.b32.xlu1 %v4484_v23, %s4157_s23 }
 0x6f5   : > { %v1068_v36 = vpop.xlane.xlu1 %1067 }
 0x6f6   : > { %3981 = vrcp.f32 %v1068_v36 }
 0x6f9   : > { %v1153_v40 = vpop.permute.xlu1 %1152 }
 0x700   : > { %v3982_v37 = vpop.eup %3981 }
 0x701   : > { %v1070_v38 = vmul.f32 %v3982_v37, %v3980_v34  ;;  %v1674_v34 = vld [vmem:[%s5055_s10 + $0x10] sm:$0xff] }
 0x702   : > { %v3828_v36 = vpack.c.bf16 %v1675_v35, %v1674_v34 }
 0x703   : > { %3574 = vmatmul.mubr.msk.f32.vlgmr.msra.gmra.mrb[4].mxu1 %vm1073_vm9, %v1070_v38 }
 0x704   : > { %3577 = vmatpush3.xpose.msk.msra.mxu1 %vm983_vm6, %v1155_v39  ;;  %3578 = vmatprep.mubr.msk.f32.mxu1 %vm4152_vm4, %v4153_v10 }
 0x705   : > { %3581 = vmatprep.subr.mxu1 %v4153_v10 }
 0x707   : > { %3579 = vmatmul.mubr.msk.f32.vlgmr.msra.gmra.mrb[6].mxu1 %vm983_vm6, %v1153_v40 }
 0x708   : > { %3583 = vmatprep.mubr.msk.f32.mxu1 %vm4152_vm4, %v4153_v10 }
 0x7d6   : > { %v1146_v41 = vpop.f32.mrb[4].mxu1 }
 0x7d7   : > { %1151 = vst.msk [vmem:[#allocation3] sm:$0x1f] %vm1150_vm10, %v1146_v41  ;;  %v3575_v42 = vpop.f32.mrb[5].mxu1  ;;  %v3375_v41 = vld [vmem:[%s5056_s11] ss:$0 sm:$0xff] }
 0x7da   : > { %v1226_v43 = vpop.f32.mrb[6].mxu1 }
 0x7db   : > { %v1230_v44 = vmul.f32 0.35355338, %v1226_v43  ;;  %v3580_v45 = vpop.f32.mrb[7].mxu1 }
 0x7dd   : > { %v1231_v46 = vsel %vm1059_vm7, %v1230_v44, -inf }
 0x7de   : > { %1232 = vmax.xlane.f32.xlu0 %v1231_v46 }
 0x7f4   : > { %1242 = vrot.lane.b32.xlu0 %v4484_v23, %s5090_s25  ;;  %s5129_s25 = smov 72  }
 0x7f8   : > { %1325 = vrot.lane.b32.xlu0 %v4484_v23, %s5089_s27  ;;  %s5130_s27 = smov 48  }
 0x86b   : > { %v1233_v47 = vpop.xlane.xlu0 %1232 }
 0x86c   : > { %v1234_v48 = vsub.f32 %v1230_v44, %v1233_v47 }
 0x86e   : > { %v1235_v49 = vmul.f32 1.442695, %v1234_v48 }
 0x86f   : > { %v1243_v50 = vpop.permute.xlu0 %1242 }
 0x870   : > { %3983 = vpow2.f32 %v1235_v49  ;;  %3582 = vmatpush3.msk.msra.mxu1 %vm1077_vm8, %v1243_v50 }
 0x871   : > { %3586 = vmatprep.subr.mxu1 %v4153_v10 }
 0x873   : > { %v1326_v57 = vpop.permute.xlu0 %1325 }
 0x87a   : > { %v3984_v51 = vpop.eup %3983 }
 0x87b   : > { %v1237_v52 = vsel %vm1059_vm7, %v3984_v51, 0.0 }
 0x87c   : > { %1238 = vadd.xlane.f32.xlu1 %v1237_v52  ;;  %v1786_v52 = vld [vmem:[%s5059_s14] sm:$0xff] }
 0x88d   : > { %1327 = vrot.lane.b32.xlu1 %v4484_v23, %s5091_s6  ;;  %s5131_s6 = smov 8  }
 0x909   : > { %v1239_v53 = vpop.xlane.xlu1 %1238 }
 0x90a   : > { %3985 = vrcp.f32 %v1239_v53 }
 0x90d   : > { %v1328_v56 = vpop.permute.xlu1 %1327 }
 0x914   : > { %v3986_v54 = vpop.eup %3985 }
 0x915   : > { %v1241_v55 = vmul.f32 %v3986_v54, %v3984_v51  ;;  %v1788_v54 = vld [vmem:[%s5059_s14 + $0x10] sm:$0xff] }
 0x917   : > { %3584 = vmatmul.mubr.msk.f32.vlgmr.msra.gmra.mrb[8].mxu1 %vm1073_vm9, %v1241_v55  ;;  %v1789_v55 = vld [vmem:[%s5059_s14 + $0x18] sm:$0xff] }
 0x918   : > { %3587 = vmatpush3.xpose.msk.msra.mxu1 %vm983_vm6, %v1328_v56  ;;  %3588 = vmatprep.mubr.msk.f32.mxu1 %vm4152_vm4, %v4153_v10  ;;  %v3834_v56 = vpack.c.bf16 %v1789_v55, %v1788_v54 }
 0x919   : > { %3591 = vmatprep.subr.mxu1 %v4153_v10 }
 0x91b   : > { %3589 = vmatmul.mubr.msk.f32.vlgmr.msra.gmra.mrb[10].mxu1 %vm983_vm6, %v1326_v57 }
 0x91c   : > { %3593 = vmatprep.mubr.msk.f32.mxu1 %vm4152_vm4, %v4153_v10 }
 0x9ea   : > { %v1315_v58 = vpop.f32.mrb[8].mxu1 }
 0x9eb   : > { %v3585_v59 = vpop.f32.mrb[9].mxu1 }
 0x9ee   : > { %v1399_v60 = vpop.f32.mrb[10].mxu1 }
 0x9ef   : > { %v1403_v62 = vmul.f32 0.35355338, %v1399_v60  ;;  %v3590_v63 = vpop.f32.mrb[11].mxu1 }
 0x9f1   : > { %v1404_v0 = vsel %vm1059_vm7, %v1403_v62, -inf }
 0x9f2   : > { %1405 = vmax.xlane.f32.xlu1 %v1404_v0  ;;  %v3378_v0 = vld [vmem:[%s5058_s13] ss:$0 sm:$0xff] }
 0xa03   : > { %1500 = vrot.lane.b32.xlu1 %v4484_v23, %s5087_s24  ;;  %s5132_s24 = smov 40  }
 0xa07   : > { %1498 = vrot.lane.b32.xlu1 %v4484_v23, %s5088_s3  ;;  %s4903_s3 = sand.u32 1, %s4141_s30  }
 0xa7f   : > { %v1406_v1 = vpop.xlane.xlu1 %1405 }
 0xa80   : > { %v1407_v2 = vsub.f32 %v1403_v62, %v1406_v1  ;;  %v3377_v62 = vld [vmem:[%s5057_s12] ss:$0 sm:$0xff] }
 0xa82   : > { %v1408_v4 = vmul.f32 1.442695, %v1407_v2 }
 0xa83   : > { %v1501_v11 = vpop.permute.xlu1 %1500 }
 0xa84   : > { %3987 = vpow2.f32 %v1408_v4  ;;  %v1878_v4 = vld [vmem:[%s5061_s16] sm:$0xff] }
 0xa87   : > { %v1499_v13 = vpop.permute.xlu1 %1498 }
 0xa8e   : > { %v3988_v5 = vpop.eup %3987 }
 0xa8f   : > { %v1410_v6 = vsel %vm1059_vm7, %v3988_v5, 0.0 }
 0xa90   : > { %1411 = vadd.xlane.f32.xlu0 %v1410_v6 }
 0xaa6   : > { %1415 = vrot.lane.b32.xlu0 %v4484_v23, %s5083_s29  ;;  %s5086_s29 = smov 8  }
 0xb1d   : > { %v1412_v7 = vpop.xlane.xlu0 %1411 }
 0xb1e   : > { %3989 = vrcp.f32 %v1412_v7  ;;  %v1880_v7 = vld [vmem:[%s5061_s16 + $0x10] sm:$0xff] }
 0xb21   : > { %v1416_v8 = vpop.permute.xlu0 %1415 }
 0xb22   : > { %3592 = vmatpush3.msk.msra.mxu1 %vm1077_vm8, %v1416_v8  ;;  %v1881_v8 = vld [vmem:[%s5061_s16 + $0x18] sm:$0xff] }
 0xb23   : > { %3596 = vmatprep.subr.mxu1 %v4153_v10 }
 0xb28   : > { %v3990_v9 = vpop.eup %3989 }
 0xb29   : > { %v1414_v12 = vmul.f32 %v3990_v9, %v3988_v5  ;;  %v1879_v5 = vld [vmem:[%s5061_s16 + $0x8] sm:$0xff]  ;;  %v3840_v9 = vpack.c.bf16 %v1881_v8, %v1880_v7 }
 0xb2a   : > { %v3837_v6 = vpack.c.bf16 %v1879_v5, %v1878_v4 }
 0xb2b   : > { %3594 = vmatmul.mubr.msk.f32.vlgmr.msra.gmra.mrb[12].mxu1 %vm1073_vm9, %v1414_v12  ;;  %v1883_v12 = vld [vmem:[%s5061_s16 + $0x28] sm:$0xff] }
 0xb2c   : > { %3597 = vmatpush3.xpose.msk.msra.mxu1 %vm983_vm6, %v1501_v11  ;;  %3598 = vmatprep.mubr.msk.f32.mxu1 %vm4152_vm4, %v4153_v10  ;;  %v1882_v11 = vld [vmem:[%s5061_s16 + $0x20] sm:$0xff] }
 0xb2d   : > { %3601 = vmatprep.subr.mxu1 %v4153_v10 }
 0xb2f   : > { %3599 = vmatmul.mubr.msk.f32.vlgmr.msra.gmra.mrb[14].mxu1 %vm983_vm6, %v1499_v13  ;;  %v3843_v13 = vpack.c.bf16 %v1883_v12, %v1882_v11 }
 0xb30   : > { %3603 = vmatprep.mubr.msk.f32.mxu1 %vm4152_vm4, %v4153_v10 }
 0xbfe   : > { %v1488_v14 = vpop.f32.mrb[12].mxu1 }
 0xbff   : > { %v3595_v15 = vpop.f32.mrb[13].mxu1 }
 0xc00   : > { %v1885_v15 = vld [vmem:[%s5061_s16 + $0x38] sm:$0xff] }
 0xc02   : > { %v1572_v16 = vpop.f32.mrb[14].mxu1 }
 0xc03   : > { %v1576_v17 = vmul.f32 0.35355338, %v1572_v16  ;;  %v3600_v18 = vpop.f32.mrb[15].mxu1 }
 0xc04   : > { %v1887_v18 = vld [vmem:[%s5061_s16 + $0x48] sm:$0xff] }
 0xc05   : > { %v1577_v19 = vsel %vm1059_vm7, %v1576_v17, -inf }
 0xc06   : > { %1578 = vmax.xlane.f32.xlu0 %v1577_v19 }
 0xc1c   : > { %1588 = vrot.lane.b32.xlu0 %v4484_v23, %s5085_s4  ;;  %s5092_s4 = smov 24  }
 0xc20   : > { %1493 = vrot.lane.b32.xlu0 %v1488_v14, %s5084_s28  ;;  %v1884_v14 = vld [vmem:[%s5061_s16 + $0x30] sm:$0xff] }
 0xc21   : > { %v3846_v16 = vpack.c.bf16 %v1885_v15, %v1884_v14 }
 0xc93   : > { %v1579_v20 = vpop.xlane.xlu0 %1578 }
 0xc94   : > { %v1580_v21 = vsub.f32 %v1576_v17, %v1579_v20  ;;  %v1886_v17 = vld [vmem:[%s5061_s16 + $0x40] sm:$0xff]  ;;  %v1888_v20 = vld [vmem:[%s5061_s16 + $0x50] sm:$0xff] }
 0xc95   : > { %v3849_v19 = vpack.c.bf16 %v1887_v18, %v1886_v17 }
 0xc96   : > { %v1581_v22 = vmul.f32 1.442695, %v1580_v21  ;;  %v1889_v21 = vld [vmem:[%s5061_s16 + $0x58] sm:$0xff] }
 0xc97   : > { %v1589_v24 = vpop.permute.xlu0 %1588 }
 0xc98   : > { %3991 = vpow2.f32 %v1581_v22  ;;  %3602 = vmatpush3.msk.msra.mxu1 %vm1077_vm8, %v1589_v24  ;;  %v3852_v22 = vpack.c.bf16 %v1889_v21, %v1888_v20  ;;  %v1890_v24 = vld [vmem:[%s5061_s16 + $0x60] sm:$0xff] }
 0xc99   : > { %3824 = vmatprep.subr.bf16.mxu1 %v4151_v3 }
 0xc9b   : > { %v1494_v28 = vpop.permute.xlu0 %1493 }
 0xca2   : > { %v3992_v25 = vpop.eup %3991 }
 0xca3   : > { %v1583_v26 = vsel %vm1059_vm7, %v3992_v25, 0.0 }
 0xca4   : > { %1584 = vadd.xlane.f32.xlu1 %v1583_v26 }
 0xcb5   : > { %1320 = vrot.lane.b32.xlu1 %v1315_v58, %s5086_s29  ;;  %s712_s29 = scalar_lea.vmem [#allocation6], %s4903_s3 }
 0xd31   : > { %v1585_v23 = vpop.xlane.xlu1 %1584 }
 0xd32   : > { %3993 = vrcp.f32 %v1585_v23  ;;  %v1892_v23 = vld [vmem:[%s5061_s16 + $0x70] sm:$0xff] }
 0xd35   : > { %v1321_v27 = vpop.permute.xlu1 %1320 }
 0xd36   : > { %1324 = vst.msk [vmem:[#allocation3] sm:$0x1f] %vm1323_vm11, %v1321_v27  ;;  %v1893_v27 = vld [vmem:[%s5061_s16 + $0x78] sm:$0xff] }
 0xd37   : > { %1497 = vst.msk [vmem:[#allocation3] sm:$0x1f] %vm1496_vm12, %v1494_v28  ;;  %v3858_v28 = vpack.c.bf16 %v1893_v27, %v1892_v23 }
 0xd3c   : > { %v3994_v29 = vpop.eup %3993 }
 0xd3d   : > { %v1587_v30 = vmul.f32 %v3994_v29, %v3992_v25  ;;  %v1891_v25 = vld [vmem:[%s5061_s16 + $0x68] sm:$0xff]  ;;  %v3379_v29 = vld [vmem:[%s5060_s15] ss:$0 sm:$0xff] }
 0xd3e   : > { %v3855_v26 = vpack.c.bf16 %v1891_v25, %v1890_v24 }
 0xd3f   : > { %3604 = vmatmul.mubr.msk.f32.vlgmr.msra.gmra.mrb[16].mxu1 %vm1073_vm9, %v1587_v30 }
 0xd40   : > { %3614 = vmatprep.mubr.msk.f32.mxu1 %vm4152_vm4, %v4153_v10  ;;  %3826 = vmatpush3.bf16.msra.mxu1 %v3825_v33 }
 0xd41   : > { %3827 = vmatprep.subr.bf16.mxu1 %v4151_v3 }
 0xd44   : > { %3829 = vmatpush3.bf16.msra.mxu1 %v3828_v36 }
 0xd45   : > { %3830 = vmatprep.subr.bf16.mxu1 %v4151_v3 }
 0xe12   : > { %v1661_v37 = vpop.f32.mrb[16].mxu1 }
 0xe13   : > { %1666 = vrot.lane.b32.xlu1 %v1661_v37, %s5092_s4  ;;  %v3605_v38 = vpop.f32.mrb[17].mxu1  ;;  %s5093_s4 = scalar_lea.vmem [#allocation8], %s4903_s3 }
 0xe85   : > { %v1667_v39 = vpop.permute.xlu1 %1666 }
 0xe86   : > { %1670 = vst.msk [vmem:[#allocation3] sm:$0x1f] %vm1669_vm13, %v1667_v39  ;;  %v3382_v39 = vld [vmem:[%s5062_s17] ss:$0 sm:$0xff] }
 0xe8d   : > { %v1671_v40 = vld [vmem:[#allocation3] sm:$0x1f] }
 0xe8e   : > { %3615 = vmatmul.mubr.msk.f32.vlgmr.msra.gmra.mrb[18].mxu1 %vm906_vm5, %v1671_v40 }
 0xe8f   : > { %3625 = vmatprep.mubr.msk.f32.mxu1 %vm4152_vm4, %v4153_v10 }
 0xf61   : > { %v1752_v42 = vpop.f32.mrb[18].mxu1 }
 0xf62   : > { %v1753_v43 = vadd.f32 %v3375_v41, %v1752_v42  ;;  %v3616_v44 = vpop.f32.mrb[19].mxu1 }
 0xf64   : > { %v4585_v45 = vadd.f32 %v1753_v43, %v4448_v61  ;;  %v1787_v61 = vld [vmem:[%s5059_s14 + $0x8] sm:$0xff] }
 0xf65   : > { %v3831_v53 = vpack.c.bf16 %v1787_v61, %v1786_v52  ;;  %v3389_v61 = vld [vmem:[%s5053_s8 + $0x30] sm:$0xff] }
 0xf66   : > { %v1759_v46 = vsel %vm837_vm3, %v4585_v45, 0.0 }
 0xf67   : > { %1760 = vadd.xlane.f32.xlu0 %v1759_v46  ;;  %3832 = vmatpush3.bf16.msra.mxu1 %v3831_v53  ;;  %v3390_v53 = vld [vmem:[%s5053_s8 + $0x38] sm:$0xff] }
 0xf68   : > { %3833 = vmatprep.subr.bf16.mxu1 %v4151_v3  ;;  %v3864_v54 = vpack.c.bf16 %v3390_v53, %v3389_v61 }
 0xf6b   : > { %3835 = vmatpush3.bf16.msra.mxu1 %v3834_v56 }
 0xf6c   : > { %3836 = vmatprep.subr.bf16.mxu1 %v4151_v3 }
 0xff4   : > { %v1761_v47 = vpop.xlane.xlu0 %1760 }
 0xff5   : > { %v1762_v48 = vmul.f32 0.03125, %v1761_v47 }
 0xff7   : > { %v1763_v49 = vsub.f32 %v4585_v45, %v1762_v48 }
 0xff9   : > { %v1764_v50 = vmul.f32 %v1763_v49, %v1763_v49 }
 0xffb   : > { %v1765_v51 = vsel %vm837_vm3, %v1764_v50, 0.0 }
 0xffc   : > { %1766 = vadd.xlane.f32.xlu1 %v1765_v51  ;;  %v3387_v51 = vld [vmem:[%s5053_s8 + $0x20] sm:$0xff] }
0x1089   : > { %v1767_v57 = vpop.xlane.xlu1 %1766 }
0x108a   : > { %v1768_v58 = vmul.f32 0.03125, %v1767_v57 }
0x108c   : > { %v1769_v59 = vadd.f32 1e-05, %v1768_v58 }
0x108e   : > { %3995 = vrsqrt.f32 %v1769_v59  ;;  %v3385_v59 = vld [vmem:[%s5123_s26 + $0x1] ss:$0 sm:$0xff] }
0x1098   : > { %v3996_v60 = vpop.eup %3995 }
0x1099   : > { %v1771_v63 = vmul.f32 %v3996_v60, %v1763_v49 }
0x109b   : > { %v1778_v1 = vmul.f32 %v3377_v62, %v1771_v63  ;;  %v3386_v62 = vld [vmem:[%s5124_s2 + $0x1] ss:$0 sm:$0xff] }
0x109d   : > { %v1785_v2 = vadd.f32 %v3378_v0, %v1778_v1  ;;  %v3392_v1 = vld [vmem:[%s5054_s9 + $0x1] ss:$0 sm:$0xff] }
0x109f   : > { %3626 = vmatmul.mubr.msk.f32.vlgmr.msra.gmra.mrb[20].mxu1 %vm906_vm5, %v1785_v2 }
0x10a0   : > { %3660 = vmatprep.mubr.msk.f32.mxu1 %vm4152_vm4, %v4153_v10  ;;  %3838 = vmatpush3.bf16.msra.mxu1 %v3837_v6 }
0x10a1   : > { %3839 = vmatprep.subr.bf16.mxu1 %v4151_v3 }
0x10a4   : > { %3841 = vmatpush3.bf16.msra.mxu1 %v3840_v9 }
0x10a5   : > { %3842 = vmatprep.subr.bf16.mxu1 %v4151_v3 }
0x10a8   : > { %3844 = vmatpush3.bf16.msra.mxu1 %v3843_v13 }
0x10a9   : > { %3845 = vmatprep.subr.bf16.mxu1 %v4151_v3 }
0x10ac   : > { %3847 = vmatpush3.bf16.msra.mxu1 %v3846_v16 }
0x10ad   : > { %3848 = vmatprep.subr.bf16.mxu1 %v4151_v3 }
0x10b0   : > { %3850 = vmatpush3.bf16.msra.mxu1 %v3849_v19 }
0x10b1   : > { %3851 = vmatprep.subr.bf16.mxu1 %v4151_v3 }
0x10b4   : > { %3853 = vmatpush3.bf16.msra.mxu1 %v3852_v22 }
0x10b5   : > { %3854 = vmatprep.subr.bf16.mxu1 %v4151_v3 }
0x10b8   : > { %3856 = vmatpush3.bf16.msra.mxu1 %v3855_v26 }
0x10b9   : > { %3857 = vmatprep.subr.bf16.mxu1 %v4151_v3 }
0x10bc   : > { %3859 = vmatpush3.bf16.msra.mxu1 %v3858_v28 }
0x10bd   : > { %3674 = vmatprep.subr.mxu1 %v4153_v10 }
0x1172   : > { %v1866_v30 = vpop.f32.mrb[20].mxu1 }
0x1173   : > { %v1867_v31 = vadd.f32 %v3379_v29, %v1866_v30  ;;  %v3627_v32 = vpop.f32.mrb[21].mxu1 }
0x1175   : > { %v3381_v33 = vmul.f32 -1.702, %v1867_v31 }
0x1177   : > { %v1872_v34 = vmul.f32 1.442695, %v3381_v33 }
0x1179   : > { %3997 = vpow2.f32 %v1872_v34 }
0x1183   : > { %v3998_v35 = vpop.eup %3997 }
0x1184   : > { %v1874_v36 = vadd.f32 1.0, %v3998_v35 }
0x1186   : > { %3999 = vrcp.f32 %v1874_v36 }
0x1190   : > { %v4000_v37 = vpop.eup %3999 }
0x1191   : > { %v1877_v38 = vmul.f32 %v4000_v37, %v1867_v31 }
0x1193   : > { %3661 = vmatmul.mubr.f32.vlgmr.msra.gmra.mrb[22].mxu1 %v1877_v38 }
0x1194   : > { %3676 = vmatprep.mubr.msk.f32.mxu1 %vm4152_vm4, %v4153_v10 }
0x1266   : > { %v1967_v40 = vpop.f32.mrb[22].mxu1 }
0x1267   : > { %v1968_v41 = vadd.f32 %v3382_v39, %v1967_v40  ;;  %v3662_v42 = vpop.f32.mrb[23].mxu1 }
0x1269   : > { %v4679_v43 = vadd.f32 %v1968_v41, %v4585_v45  ;;  %v3388_v45 = vld [vmem:[%s5053_s8 + $0x28] sm:$0xff] }
0x126a   : > { %v3861_v52 = vpack.c.bf16 %v3388_v45, %v3387_v51 }
0x126b   : > { %v1976_v44 = vsel %vm837_vm3, %v4679_v43, 0.0 }
0x126c   : > { %1977 = vadd.xlane.f32.xlu0 %v1976_v44  ;;  %3862 = vmatpush3.bf16.msra.mxu0 %v3861_v52 }
0x126d   : > { %3863 = vmatprep.subr.bf16.mxu0 %v4151_v3 }
0x1270   : > { %3865 = vmatpush3.bf16.msra.mxu0 %v3864_v54 }
0x1271   : > { %3679 = vmatprep.subr.mxu0 %v4153_v10 }
0x12f9   : > { %v1978_v46 = vpop.xlane.xlu0 %1977 }
0x12fa   : > { %v1979_v47 = vmul.f32 0.03125, %v1978_v46 }
0x12fc   : > { %v1980_v48 = vsub.f32 %v4679_v43, %v1979_v47 }
0x12fe   : > { %v1981_v49 = vmul.f32 %v1980_v48, %v1980_v48 }
0x1300   : > { %v1982_v50 = vsel %vm837_vm3, %v1981_v49, 0.0 }
0x1301   : > { %1983 = vadd.xlane.f32.xlu0 %v1982_v50 }
0x138e   : > { %v1984_v55 = vpop.xlane.xlu0 %1983 }
0x138f   : > { %v1985_v56 = vmul.f32 0.03125, %v1984_v55 }
0x1391   : > { %v1986_v57 = vadd.f32 1e-05, %v1985_v56 }
0x1393   : > { %4001 = vrsqrt.f32 %v1986_v57 }
0x139d   : > { %v4002_v58 = vpop.eup %4001 }
0x139e   : > { %v1988_v60 = vmul.f32 %v4002_v58, %v1980_v48 }
0x13a0   : > { %v1995_v63 = vmul.f32 %v3385_v59, %v1988_v60 }
0x13a2   : > { %v2002_v0 = vadd.f32 %v3386_v62, %v1995_v63 }
0x13a4   : > { %3672 = vmatmul.mubr.msk.f32.vlgmr.msra.gmra.mrb[2].mxu0 %vm906_vm5, %v2002_v0 }
0x13a5   : > { %3681 = vmatprep.mubr.msk.f32.mxu0 %vm4152_vm4, %v4153_v10 }
0x1477   : > { %v2085_v2 = vpop.f32.mrb[2].mxu0 }
0x1478   : > { %v4711_v4 = vadd.f32 %v3392_v1, %v2085_v2  ;;  %v3673_v5 = vpop.f32.mrb[3].mxu0 }
0x147a   : > { %2090 = vrot.lane.b32.xlu0 %v4711_v4, %s4154_s1  ;;  %s5125_s1 = smov 80  }
0x147e   : > { %2258 = vrot.lane.b32.xlu0 %v4711_v4, %s4155_s21  ;;  %s5126_s21 = smov 56  }
0x14ec   : > { %v2091_v6 = vpop.permute.xlu0 %2090 }
0x14ed   : > { %3675 = vmatpush3.xpose.msk.msra.mxu1 %vm983_vm6, %v2091_v6 }
0x14ee   : > { %3699 = vmatprep.subr.mxu1 %v4153_v10 }
0x14f0   : > { %3677 = vmatmul.mubr.msk.f32.vlgmr.msra.gmra.mrb[24].mxu1 %vm983_vm6, %v4711_v4  ;;  %v2259_v21 = vpop.permute.xlu0 %2258 }
0x14f1   : > { %3701 = vmatprep.mubr.msk.f32.mxu1 %vm4152_vm4, %v4153_v10 }
0x15c3   : > { %v2162_v7 = vpop.f32.mrb[24].mxu1 }
0x15c4   : > { %v2166_v8 = vmul.f32 0.35355338, %v2162_v7  ;;  %v3678_v9 = vpop.f32.mrb[25].mxu1 }
0x15c6   : > { %v2167_v11 = vsel %vm1059_vm7, %v2166_v8, -inf }
0x15c7   : > { %2168 = vmax.xlane.f32.xlu1 %v2167_v11  ;;  %v3411_v11 = vld [vmem:[%s5055_s10 + $0x28] sm:$0xff] }
0x15d8   : > { %2178 = vrot.lane.b32.xlu1 %v4711_v4, %s4156_s22  ;;  %s5127_s22 = smov 112  }
0x1654   : > { %v2169_v12 = vpop.xlane.xlu1 %2168 }
0x1655   : > { %v2170_v13 = vsub.f32 %v2166_v8, %v2169_v12 }
0x1657   : > { %v2171_v14 = vmul.f32 1.442695, %v2170_v13  ;;  %v3412_v13 = vld [vmem:[%s5055_s10 + $0x30] sm:$0xff] }
0x1658   : > { %v2179_v15 = vpop.permute.xlu1 %2178 }
0x1659   : > { %4003 = vpow2.f32 %v2171_v14  ;;  %3680 = vmatpush3.msk.msra.mxu0 %vm1077_vm8, %v2179_v15  ;;  %v3413_v14 = vld [vmem:[%s5055_s10 + $0x38] sm:$0xff] }
0x165a   : > { %3684 = vmatprep.subr.mxu0 %v4153_v10  ;;  %v3870_v15 = vpack.c.bf16 %v3413_v14, %v3412_v13 }
0x1663   : > { %v4004_v16 = vpop.eup %4003 }
0x1664   : > { %v2173_v17 = vsel %vm1059_vm7, %v4004_v16, 0.0 }
0x1665   : > { %2174 = vadd.xlane.f32.xlu1 %v2173_v17 }
0x1676   : > { %2256 = vrot.lane.b32.xlu1 %v4711_v4, %s4157_s23  ;;  %s5128_s23 = smov 104  }
0x167a   : > { %2430 = vrot.lane.b32.xlu1 %v4711_v4, %s5125_s1 }
0x16f2   : > { %v2175_v18 = vpop.xlane.xlu1 %2174 }
0x16f3   : > { %4005 = vrcp.f32 %v2175_v18 }
0x16f6   : > { %v2257_v22 = vpop.permute.xlu1 %2256 }
0x16fa   : > { %v2431_v35 = vpop.permute.xlu1 %2430 }
0x16fd   : > { %v4006_v19 = vpop.eup %4005 }
0x16fe   : > { %v2177_v20 = vmul.f32 %v4006_v19, %v4004_v16 }
0x1700   : > { %3682 = vmatmul.mubr.msk.f32.vlgmr.msra.gmra.mrb[4].mxu0 %vm1073_vm9, %v2177_v20 }
0x1701   : > { %3685 = vmatpush3.xpose.msk.msra.mxu0 %vm983_vm6, %v2259_v21  ;;  %3686 = vmatprep.mubr.msk.f32.mxu0 %vm4152_vm4, %v4153_v10 }
0x1702   : > { %3689 = vmatprep.subr.mxu0 %v4153_v10 }
0x1704   : > { %3687 = vmatmul.mubr.msk.f32.vlgmr.msra.gmra.mrb[6].mxu0 %vm983_vm6, %v2257_v22 }
0x1705   : > { %3691 = vmatprep.mubr.msk.f32.mxu0 %vm4152_vm4, %v4153_v10 }
0x17d3   : > { %v2251_v24 = vpop.f32.mrb[4].mxu0 }
0x17d4   : > { %2255 = vst.msk [vmem:[#allocation3] sm:$0x1f] %vm1150_vm10, %v2251_v24  ;;  %v3683_v25 = vpop.f32.mrb[5].mxu0  ;;  %v3415_v24 = vld [vmem:[%s5056_s11 + $0x1] ss:$0 sm:$0xff] }
0x17d7   : > { %v2330_v26 = vpop.f32.mrb[6].mxu0 }
0x17d8   : > { %v2334_v23 = vmul.f32 0.35355338, %v2330_v26  ;;  %v3688_v27 = vpop.f32.mrb[7].mxu0 }
0x17da   : > { %v2335_v28 = vsel %vm1059_vm7, %v2334_v23, -inf }
0x17db   : > { %2336 = vmax.xlane.f32.xlu0 %v2335_v28 }
0x17f1   : > { %2346 = vrot.lane.b32.xlu0 %v4711_v4, %s5126_s21  ;;  %s4168_s21 = smov [#allocation6]  }
0x17f2   : > { %s4031_s0 = sshll.u32 %s4168_s21, 4  ;;  %s4032_s0 = int_to_ptr.vmem [resolvable:$false] %s4031_s0 }
0x17f5   : > { %2428 = vrot.lane.b32.xlu0 %v4711_v4, %s5127_s22  ;;  %s3195_s22 = sand.u32 1, %s4312_s5  }
0x17f6   : > { %s4949_s28 = scalar_lea.sflag [#allocation7], %s3195_s22 }
0x17f9   : > { %2600 = vrot.lane.b32.xlu0 %v4711_v4, %s5128_s23  ;;  %s4939_s23 = sshll.u32 %s4312_s5, 4  ;;  %s4033_s5 = scalar_lea.vmem %s4032_s0, 32 }
0x1868   : > { %v2337_v29 = vpop.xlane.xlu0 %2336 }
0x1869   : > { %v2338_v30 = vsub.f32 %v2334_v23, %v2337_v29 }
0x186b   : > { %v2339_v31 = vmul.f32 1.442695, %v2338_v30 }
0x186c   : > { %v2347_v32 = vpop.permute.xlu0 %2346 }
0x186d   : > { %4007 = vpow2.f32 %v2339_v31  ;;  %3690 = vmatpush3.msk.msra.mxu0 %vm1077_vm8, %v2347_v32 }
0x186e   : > { %3694 = vmatprep.subr.mxu0 %v4153_v10 }
0x1870   : > { %v2429_v39 = vpop.permute.xlu0 %2428 }
0x1874   : > { %v2601_v41 = vpop.permute.xlu0 %2600 }
0x1877   : > { %v4008_v33 = vpop.eup %4007 }
0x1878   : > { %v2341_v34 = vsel %vm1059_vm7, %v4008_v33, 0.0 }
0x1879   : > { %2342 = vadd.xlane.f32.xlu1 %v2341_v34  ;;  %v3421_v34 = vld [vmem:[%s5059_s14 + $0x20] sm:$0xff] }
0x188a   : > { %2602 = vrot.lane.b32.xlu1 %v4711_v4, %s5129_s25  ;;  %s5133_s25 = smov 16  }
0x1906   : > { %v2343_v36 = vpop.xlane.xlu1 %2342 }
0x1907   : > { %4009 = vrcp.f32 %v2343_v36  ;;  %v3423_v36 = vld [vmem:[%s5059_s14 + $0x30] sm:$0xff] }
0x190a   : > { %v2603_v40 = vpop.permute.xlu1 %2602 }
0x1911   : > { %v4010_v37 = vpop.eup %4009 }
0x1912   : > { %v2345_v38 = vmul.f32 %v4010_v37, %v4008_v33  ;;  %v3424_v37 = vld [vmem:[%s5059_s14 + $0x38] sm:$0xff] }
0x1914   : > { %3692 = vmatmul.mubr.msk.f32.vlgmr.msra.gmra.mrb[8].mxu0 %vm1073_vm9, %v2345_v38  ;;  %v3876_v38 = vpack.c.bf16 %v3424_v37, %v3423_v36 }
0x1915   : > { %3695 = vmatpush3.xpose.msk.msra.mxu0 %vm983_vm6, %v2431_v35  ;;  %3696 = vmatprep.mubr.msk.f32.mxu0 %vm4152_vm4, %v4153_v10 }
0x1916   : > { %3704 = vmatprep.subr.mxu0 %v4153_v10 }
0x1918   : > { %3697 = vmatmul.mubr.msk.f32.vlgmr.msra.gmra.mrb[10].mxu0 %vm983_vm6, %v2429_v39 }
0x1919   : > { %3705 = vmatpush3.xpose.msk.msra.mxu0 %vm983_vm6, %v2603_v40  ;;  %3706 = vmatprep.mubr.msk.f32.mxu0 %vm4152_vm4, %v4153_v10 }
0x191a   : > { %3866 = vmatprep.subr.bf16.mxu0 %v4151_v3 }
0x191c   : > { %3707 = vmatmul.mubr.msk.f32.vlgmr.msra.gmra.mrb[12].mxu0 %vm983_vm6, %v2601_v41 }
0x191d   : > { %3722 = vmatprep.mubr.msk.f32.mxu0 %vm4152_vm4, %v4153_v10 }
0x19e7   : > { %v2419_v42 = vpop.f32.mrb[8].mxu0 }
0x19e8   : > { %v3693_v44 = vpop.f32.mrb[9].mxu0 }
0x19e9   : > { %v3419_v44 = vld [vmem:[%s5057_s12 + $0x1] ss:$0 sm:$0xff] }
0x19eb   : > { %v2502_v46 = vpop.f32.mrb[10].mxu0 }
0x19ec   : > { %v2506_v47 = vmul.f32 0.35355338, %v2502_v46  ;;  %v3698_v48 = vpop.f32.mrb[11].mxu0 }
0x19ee   : > { %v2507_v49 = vsel %vm1059_vm7, %v2506_v47, -inf }
0x19ef   : > { %2508 = vmax.xlane.f32.xlu1 %v2507_v49  ;;  %v2674_v50 = vpop.f32.mrb[12].mxu0 }
0x19f0   : > { %v2678_v51 = vmul.f32 0.35355338, %v2674_v50  ;;  %v3708_v45 = vpop.f32.mrb[13].mxu0  ;;  %v3429_v50 = vld [vmem:[%s5061_s16 + $0x80] sm:$0xff] }
0x19f2   : > { %v2679_v52 = vsel %vm1059_vm7, %v2678_v51, -inf }
0x19f3   : > { %2680 = vmax.xlane.f32.xlu0 %v2679_v52  ;;  %v3431_v52 = vld [vmem:[%s5061_s16 + $0x90] sm:$0xff] }
0x1a00   : > { %2518 = vrot.lane.b32.xlu1 %v4711_v4, %s5130_s27  ;;  %s5134_s27 = smov 24  }
0x1a04   : > { %2424 = vrot.lane.b32.xlu1 %v2419_v42, %s5131_s6  ;;  %s5135_s6 = sld [smem:[#allocation26_spill]] }
0x1a7c   : > { %v2509_v61 = vpop.xlane.xlu1 %2508 }
0x1a7d   : > { %v2510_v53 = vsub.f32 %v2506_v47, %v2509_v61  ;;  %v3420_v47 = vld [vmem:[%s5058_s13 + $0x1] ss:$0 sm:$0xff] }
0x1a7f   : > { %v2511_v54 = vmul.f32 1.442695, %v2510_v53  ;;  %v3433_v53 = vld [vmem:[%s5061_s16 + $0xa0] sm:$0xff] }
0x1a80   : > { %v2681_v55 = vpop.xlane.xlu0 %2680  ;;  %v2519_v56 = vpop.permute.xlu1 %2518 }
0x1a81   : > { %4011 = vpow2.f32 %v2511_v54  ;;  %v2682_v57 = vsub.f32 %v2678_v51, %v2681_v55  ;;  %3700 = vmatpush3.msk.msra.mxu1 %vm1077_vm8, %v2519_v56  ;;  %v3430_v51 = vld [vmem:[%s5061_s16 + $0x88] sm:$0xff]  ;;  %v3435_v56 = vld [vmem:[%s5061_s16 + $0xb0] sm:$0xff] }
0x1a82   : > { %3709 = vmatprep.subr.mxu1 %v4153_v10  ;;  %v3879_v45 = vpack.c.bf16 %v3430_v51, %v3429_v50  ;;  %v3434_v54 = vld [vmem:[%s5061_s16 + $0xa8] sm:$0xff] }
0x1a83   : > { %v2683_v58 = vmul.f32 1.442695, %v2682_v57  ;;  %v3885_v55 = vpack.c.bf16 %v3434_v54, %v3433_v53  ;;  %v3436_v57 = vld [vmem:[%s5061_s16 + $0xb8] sm:$0xff] }
0x1a84   : > { %v2425_v59 = vpop.permute.xlu1 %2424 }
0x1a85   : > { %4013 = vpow2.f32 %v2683_v58  ;;  %2427 = vst.msk [vmem:[#allocation3] sm:$0x1f] %vm1323_vm11, %v2425_v59  ;;  %v3888_v58 = vpack.c.bf16 %v3436_v57, %v3435_v56  ;;  %v3437_v59 = vld [vmem:[%s5061_s16 + $0xc0] sm:$0xff] }
0x1a8b   : > { %v4012_v60 = vpop.eup %4011 }
0x1a8c   : > { %v2513_v62 = vsel %vm1059_vm7, %v4012_v60, 0.0 }
0x1a8d   : > { %2514 = vadd.xlane.f32.xlu0 %v2513_v62 }
0x1a8f   : > { %v4014_v63 = vpop.eup %4013 }
0x1a90   : > { %v2685_v0 = vsel %vm1059_vm7, %v4014_v63, 0.0 }
0x1a91   : > { %2686 = vadd.xlane.f32.xlu0 %v2685_v0  ;;  %v3440_v0 = vld [vmem:[%s5061_s16 + $0xd8] sm:$0xff] }
0x1aa7   : > { %2690 = vrot.lane.b32.xlu0 %v4711_v4, %s5132_s24  ;;  %v3410_v4 = vld [vmem:[%s5055_s10 + $0x20] sm:$0xff]  ;;  %s3225_s24 = sshll.u32 %s712_s29, 4  ;;  %s3226_s24 = int_to_ptr.vmem [resolvable:$true] %s3225_s24 }
0x1aa8   : > { %v3867_v12 = vpack.c.bf16 %v3411_v11, %v3410_v4  ;;  %v3426_v4 = vld [vmem:[%s5060_s15 + $0x1] ss:$0 sm:$0xff]  ;;  %s4027_s1 = scalar_lea.vmem %s3226_s24, 16  ;;  %p4034_p0 = scmp.lt.s32.totalorder %s3226_s24, %s4032_s0 }
0x1aa9   : > { %p4028_p11 = scmp.ne.s32.totalorder %s3226_s24, %s4027_s1  ;;  %p4035_p1 = scmp.lt.s32.totalorder %s4033_s5, %s4027_s1 }
0x1aaa   : > { %3868 = vmatpush3.bf16.msra.mxu0 %v3867_v12 }
0x1aab   : > { %3869 = vmatprep.subr.bf16.mxu0 %v4151_v3  ;;  %p4029_p12 = pnand %p4028_p11, %p4331_p5  ;;  %p4036_p2 = por %p4035_p1, %p4034_p0 }
0x1aad   : > { %p4030_p13 = pneg %p4029_p12 }
0x1aae   : > { %3871 = vmatpush3.bf16.msra.mxu0 %v3870_v15 }
0x1aaf   : > { %3878 = vmatprep.subr.bf16.mxu0 %v4151_v3  ;;  %p4037_p3 = pnand %p4036_p2, %p4030_p13 }
0x1b1a   : > { %v2515_v1 = vpop.xlane.xlu0 %2514 }
0x1b1b   : > { %4015 = vrcp.f32 %v2515_v1 }
0x1b1e   : > { %v2687_v2 = vpop.xlane.xlu0 %2686 }
0x1b1f   : > { %4017 = vrcp.f32 %v2687_v2  ;;  %v3441_v2 = vld [vmem:[%s5061_s16 + $0xe0] sm:$0xff] }
0x1b22   : > { %v2691_v7 = vpop.permute.xlu0 %2690 }
0x1b25   : > { %v4016_v5 = vpop.eup %4015 }
0x1b26   : > { %v2517_v6 = vmul.f32 %v4016_v5, %v4012_v60  ;;  %v3438_v60 = vld [vmem:[%s5061_s16 + $0xc8] sm:$0xff] }
0x1b27   : > { %v3891_v62 = vpack.c.bf16 %v3438_v60, %v3437_v59  ;;  %v3442_v5 = vld [vmem:[%s5061_s16 + $0xe8] sm:$0xff] }
0x1b28   : > { %3702 = vmatmul.mubr.msk.f32.vlgmr.msra.gmra.mrb[26].mxu1 %vm1073_vm9, %v2517_v6  ;;  %v3897_v6 = vpack.c.bf16 %v3442_v5, %v3441_v2 }
0x1b29   : > { %v4018_v8 = vpop.eup %4017  ;;  %3710 = vmatpush3.msk.msra.mxu1 %vm1077_vm8, %v2691_v7  ;;  %3711 = vmatprep.mubr.msk.f32.mxu1 %vm4152_vm4, %v4153_v10  ;;  %v3443_v7 = vld [vmem:[%s5061_s16 + $0xf0] sm:$0xff] }
0x1b2a   : > { %v2689_v9 = vmul.f32 %v4018_v8, %v4014_v63  ;;  %3872 = vmatprep.subr.bf16.mxu1 %v4151_v3  ;;  %v3439_v63 = vld [vmem:[%s5061_s16 + $0xd0] sm:$0xff]  ;;  %v3444_v8 = vld [vmem:[%s5061_s16 + $0xf8] sm:$0xff] }
0x1b2b   : > { %v3894_v1 = vpack.c.bf16 %v3440_v0, %v3439_v63 }
0x1b2c   : > { %3712 = vmatmul.mubr.msk.f32.vlgmr.msra.gmra.mrb[28].mxu1 %vm1073_vm9, %v2689_v9  ;;  %v3900_v9 = vpack.c.bf16 %v3444_v8, %v3443_v7 }
0x1b2d   : > { %3733 = vmatprep.mubr.msk.f32.mxu1 %vm4152_vm4, %v4153_v10 }
0x1bfb   : > { %v2591_v16 = vpop.f32.mrb[26].mxu1 }
0x1bfc   : > { %2596 = vrot.lane.b32.xlu1 %v2591_v16, %s5133_s25  ;;  %v3703_v17 = vpop.f32.mrb[27].mxu1 }
0x1bff   : > { %v2763_v18 = vpop.f32.mrb[28].mxu1 }
0x1c00   : > { %2768 = vrot.lane.b32.xlu1 %v2763_v18, %s5134_s27  ;;  %v3713_v19 = vpop.f32.mrb[29].mxu1 }
0x1c6e   : > { %v2597_v20 = vpop.permute.xlu1 %2596 }
0x1c6f   : > { %2599 = vst.msk [vmem:[#allocation3] sm:$0x1f] %vm1496_vm12, %v2597_v20  ;;  %v3446_v20 = vld [vmem:[%s5062_s17 + $0x1] ss:$0 sm:$0xff] }
0x1c72   : > { %v2769_v21 = vpop.permute.xlu1 %2768 }
0x1c73   : > { %2771 = vst.msk [vmem:[#allocation3] sm:$0x1f] %vm1669_vm13, %v2769_v21 }
0x1c7a   : > { %v2772_v22 = vld [vmem:[#allocation3] sm:$0x1f] }
0x1c7b   : > { %3723 = vmatmul.mubr.msk.f32.vlgmr.msra.gmra.mrb[14].mxu0 %vm906_vm5, %v2772_v22 }
0x1c7c   : > { %3768 = vmatprep.mubr.msk.f32.mxu0 %vm4152_vm4, %v4153_v10  ;;  %3880 = vmatpush3.bf16.msra.mxu0 %v3879_v45  ;;  %v3096_v45 = vld [vmem:[%s5064_s19] sm:$0x1] }
0x1c7d   : > { %3881 = vmatprep.subr.bf16.mxu0 %v4151_v3 }
0x1d4e   : > { %v2855_v25 = vpop.f32.mrb[14].mxu0 }
0x1d4f   : > { %v2856_v26 = vadd.f32 %v3415_v24, %v2855_v25  ;;  %v3724_v23 = vpop.f32.mrb[15].mxu0 }
0x1d51   : > { %v4812_v27 = vadd.f32 %v2856_v26, %v4679_v43  ;;  %v3422_v43 = vld [vmem:[%s5059_s14 + $0x28] sm:$0xff] }
0x1d52   : > { %v3873_v35 = vpack.c.bf16 %v3422_v43, %v3421_v34 }
0x1d53   : > { %v2864_v28 = vsel %vm837_vm3, %v4812_v27, 0.0 }
0x1d54   : > { %2865 = vadd.xlane.f32.xlu0 %v2864_v28  ;;  %3874 = vmatpush3.bf16.msra.mxu1 %v3873_v35 }
0x1d55   : > { %3875 = vmatprep.subr.bf16.mxu1 %v4151_v3 }
0x1d58   : > { %3877 = vmatpush3.bf16.msra.mxu1 %v3876_v38 }
0x1d59   : > { %3902 = vmatprep.subr.bf16.mxu1 %v4151_v3 }
0x1de1   : > { %v2866_v29 = vpop.xlane.xlu0 %2865 }
0x1de2   : > { %v2867_v30 = vmul.f32 0.03125, %v2866_v29 }
0x1de4   : > { %v2868_v31 = vsub.f32 %v4812_v27, %v2867_v30 }
0x1de6   : > { %v2869_v32 = vmul.f32 %v2868_v31, %v2868_v31 }
0x1de8   : > { %v2870_v33 = vsel %vm837_vm3, %v2869_v32, 0.0 }
0x1de9   : > { %2871 = vadd.xlane.f32.xlu1 %v2870_v33 }
0x1e76   : > { %v2872_v39 = vpop.xlane.xlu1 %2871 }
0x1e77   : > { %v2873_v40 = vmul.f32 0.03125, %v2872_v39  ;;  %v3112_v39 = vld [vmem:[%s5065_s20] sm:$0xff] }
0x1e79   : > { %v2874_v41 = vadd.f32 1e-05, %v2873_v40  ;;  %v3113_v40 = vld [vmem:[%s5065_s20 + $0x8] sm:$0xff] }
0x1e7b   : > { %4019 = vrsqrt.f32 %v2874_v41  ;;  %v3903_v41 = vpack.c.bf16 %v3113_v40, %v3112_v39 }
0x1e85   : > { %v4020_v42 = vpop.eup %4019 }
0x1e86   : > { %v2876_v46 = vmul.f32 %v4020_v42, %v2868_v31  ;;  %v3114_v42 = vld [vmem:[%s5065_s20 + $0x10] sm:$0xff] }
0x1e88   : > { %v2883_v48 = vmul.f32 %v3419_v44, %v2876_v46  ;;  %v3115_v44 = vld [vmem:[%s5065_s20 + $0x18] sm:$0xff] }
0x1e89   : > { %v3906_v46 = vpack.c.bf16 %v3115_v44, %v3114_v42 }
0x1e8a   : > { %v2890_v49 = vadd.f32 %v3420_v47, %v2883_v48 }
0x1e8c   : > { %3734 = vmatmul.mubr.msk.f32.vlgmr.msra.gmra.mrb[30].mxu1 %vm906_vm5, %v2890_v49 }
0x1e8d   : > { %3779 = vmatprep.mubr.msk.f32.mxu1 %vm4152_vm4, %v4153_v10  ;;  %v3432_v10 = vld [vmem:[%s5061_s16 + $0x98] sm:$0xff]  ;;  %3904 = vmatpush3.bf16.msra.mxu1 %v3903_v41 }
0x1e8e   : > { %v3882_v61 = vpack.c.bf16 %v3432_v10, %v3431_v52  ;;  %3905 = vmatprep.subr.bf16.mxu1 %v4151_v3 }
0x1e90   : > { %3883 = vmatpush3.bf16.msra.mxu0 %v3882_v61 }
0x1e91   : > { %3884 = vmatprep.subr.bf16.mxu0 %v4151_v3  ;;  %3907 = vmatpush3.bf16.msra.mxu1 %v3906_v46 }
0x1e94   : > { %3886 = vmatpush3.bf16.msra.mxu0 %v3885_v55 }
0x1e95   : > { %3887 = vmatprep.subr.bf16.mxu0 %v4151_v3 }
0x1e98   : > { %3889 = vmatpush3.bf16.msra.mxu0 %v3888_v58 }
0x1e99   : > { %3890 = vmatprep.subr.bf16.mxu0 %v4151_v3 }
0x1e9c   : > { %3892 = vmatpush3.bf16.msra.mxu0 %v3891_v62 }
0x1e9d   : > { %3893 = vmatprep.subr.bf16.mxu0 %v4151_v3 }
0x1ea0   : > { %3895 = vmatpush3.bf16.msra.mxu0 %v3894_v1 }
0x1ea1   : > { %3896 = vmatprep.subr.bf16.mxu0 %v4151_v3 }
0x1ea4   : > { %3898 = vmatpush3.bf16.msra.mxu0 %v3897_v6 }
0x1ea5   : > { %3899 = vmatprep.subr.bf16.mxu0 %v4151_v3  ;;  %v3095_v3 = vld [vmem:[%s5063_s18] sm:$0x1] }
0x1ea8   : > { %3901 = vmatpush3.bf16.msra.mxu0 %v3900_v9 }
0x1f5f   : > { %v2973_v11 = vpop.f32.mrb[30].mxu1 }
0x1f60   : > { %v2974_v12 = vadd.f32 %v3426_v4, %v2973_v11  ;;  %v3735_v13 = vpop.f32.mrb[31].mxu1 }
0x1f62   : > { %v3428_v14 = vmul.f32 -1.702, %v2974_v12 }
0x1f64   : > { %v2979_v15 = vmul.f32 1.442695, %v3428_v14 }
0x1f66   : > { %4021 = vpow2.f32 %v2979_v15 }
0x1f70   : > { %v4022_v16 = vpop.eup %4021 }
0x1f71   : > { %v2981_v17 = vadd.f32 1.0, %v4022_v16 }
0x1f73   : > { %4023 = vrcp.f32 %v2981_v17 }
0x1f7d   : > { %v4024_v18 = vpop.eup %4023 }
0x1f7e   : > { %v2984_v19 = vmul.f32 %v4024_v18, %v2974_v12 }
0x1f80   : > { %3769 = vmatmul.mubr.f32.vlgmr.msra.gmra.mrb[16].mxu0 %v2984_v19 }
0x2053   : > { %v3076_v21 = vpop.f32.mrb[16].mxu0 }
0x2054   : > { %v3077_v22 = vadd.f32 %v3446_v20, %v3076_v21  ;;  %v3770_v24 = vpop.f32.mrb[17].mxu0 }
0x2056   : > { %v3080_v25 = vadd.f32 %v3077_v22, %v4812_v27 }
0x2058   : > { %v3083_v26 = vrot.slane %v3080_v25, 1  ;;  %v3097_v23 = vsel %vm752_vm1, %v3080_v25, 0.0  ;;  %3081 = vst.msk [vmem:[%s712_s29] sm:$0x1] %vm752_vm1, %v3080_v25 }
0x2059   : > { %3098 = vadd.xlane.f32.xlu0 %v3097_v23 }
0x205a   : > { %v3085_v28 = vsel %vm832_vm2, %v3083_v26, 0.0 }
0x205b   : > { %v3086_v29 = vrot.slane %v3085_v28, 4 }
0x205d   : > { %v3087_v30 = vadd.f32 %v3086_v29, %v3085_v28 }
0x205f   : > { %v3088_v31 = vrot.slane %v3087_v30, 2 }
0x2061   : > { %v3089_v32 = vadd.f32 %v3088_v31, %v3087_v30 }
0x2063   : > { %v3090_v33 = vrot.slane %v3089_v32, 1 }
0x2065   : > { %v3091_v34 = vadd.f32 %v3090_v33, %v3089_v32 }
0x2067   : > { %v3093_v43 = vmul.f32 0.25, %v3091_v34 }
0x2069   : > { %3094 = vst.msk [vmem:[%s5093_s4] sm:$0x1] %vm752_vm1, %v3093_v43  ;;  %s4945_s4 = scalar_lea.hbm %s5135_s6, %s4939_s23 }
0x20e6   : > { %v3099_v27 = vpop.xlane.xlu0 %3098 }
0x20e7   : > { %v3100_v35 = vmul.f32 0.03125, %v3099_v27 }
0x20e9   : > { %v3101_v36 = vsub.f32 %v3080_v25, %v3100_v35 }
0x20eb   : > { %v3102_v37 = vmul.f32 %v3101_v36, %v3101_v36 }
0x20ed   : > { %v3103_v38 = vsel %vm752_vm1, %v3102_v37, 0.0 }
0x20ee   : > { %3104 = vadd.xlane.f32.xlu0 %v3103_v38 }
0x217b   : > { %v3105_v47 = vpop.xlane.xlu0 %3104 }
0x217c   : > { %v3106_v48 = vmul.f32 0.03125, %v3105_v47 }
0x217e   : > { %v3107_v49 = vadd.f32 1e-05, %v3106_v48 }
0x2180   : > { %4025 = vrsqrt.f32 %v3107_v49 }
0x218a   : > { %v4026_v50 = vpop.eup %4025 }
0x218b   : > { %v3109_v51 = vmul.f32 %v4026_v50, %v3101_v36 }
0x218d   : > { %v3110_v52 = vmul.f32 %v3109_v51, %v3095_v3 }
0x218f   : > { %v3111_v10 = vadd.f32 %v3110_v52, %v3096_v45 }
0x2191   : > { %3780 = vmatmul.mubr.msk.f32.vlgmr.msra.gmra.mrb[32].mxu1 %vm906_vm5, %v3111_v10 }
0x2192   : > { %4040 = shalt.err (!%p4037_p3)
}
0x2193   : > { %s4041_s29 = scalar_lea.hbm %s4945_s4, 16  ;;  %s4045_s27 = scalar_lea.hbm %s5135_s6, 32 }
0x2194   : > { %p4042_p4 = scmp.ne.s32.totalorder %s4945_s4, %s4041_s29  ;;  %p4046_p9 = scmp.lt.u32.totalorder %s4945_s4, %s5135_s6 }
0x2195   : > { %p4047_p10 = scmp.lt.u32.totalorder %s4045_s27, %s4041_s29  ;;  %p4049_p12 = scmp.lt.u32.totalorder %s4041_s29, %s4945_s4 }
0x2196   : > { %p4043_p7 = pnand %p4042_p4, %p4331_p5 }
0x2197   : > { %p4048_p11 = por %p4047_p10, %p4046_p9 }
0x2198   : > { %p4044_p8 = pneg %p4043_p7 }
0x2199   : > { %p4050_p13 = por %p4049_p12, %p4048_p11 }
0x219b   : > { %p4051_p0 = pnand %p4050_p13, %p4044_p8 }
0x219d   : > { %4054 = shalt.err (!%p4051_p0)
}
0x219e   : > { %3909 = dma.vmem_to_hbm [thread:$0]  (%p4331_p5), %s3226_s24, 16, %s4945_s4, %s4949_s28  }
0x219f   : > { %s5136_s22 = sld [smem:[#allocation27_spill]]  ;;  %s5137_s21 = scalar_lea.vmem [#allocation8], %s4903_s3 }
0x21a0   : > { %s3238_s27 = sshll.u32 %s5137_s21, 4  ;;  %s4169_s0 = smov [#allocation8]   ;;  %s3239_s27 = int_to_ptr.vmem [resolvable:$true] %s3238_s27 }
0x21a1   : > { %s4055_s29 = scalar_lea.vmem %s3239_s27, 16  ;;  %s4059_s2 = sshll.u32 %s4169_s0, 4  ;;  %s4060_s2 = int_to_ptr.vmem [resolvable:$false] %s4059_s2 }
0x21a2   : > { %p4056_p1 = scmp.ne.s32.totalorder %s3239_s27, %s4055_s29  ;;  %s4061_s6 = scalar_lea.vmem %s4060_s2, 32 }
0x21a3   : > { %p4062_p4 = scmp.lt.s32.totalorder %s3239_s27, %s4060_s2  ;;  %p4063_p7 = scmp.lt.s32.totalorder %s4061_s6, %s4055_s29 }
0x21a4   : > { %p4057_p2 = pnand %p4056_p1, %p4331_p5 }
0x21a5   : > { %s4973_s25 = scalar_lea.hbm %s5136_s22, %s4939_s23  ;;  %p4064_p8 = por %p4063_p7, %p4062_p4 }
0x21a6   : > { %p4058_p3 = pneg %p4057_p2 }
0x21a8   : > { %p4065_p9 = pnand %p4064_p8, %p4058_p3 }
0x21aa   : > { %4068 = shalt.err (!%p4065_p9)
}
0x21ab   : > { %s4069_s4 = scalar_lea.hbm %s4973_s25, 16  ;;  %s4073_s5 = scalar_lea.hbm %s5136_s22, 32 }
0x21ac   : > { %p4070_p10 = scmp.ne.s32.totalorder %s4973_s25, %s4069_s4  ;;  %p4074_p13 = scmp.lt.u32.totalorder %s4973_s25, %s5136_s22 }
0x21ad   : > { %p4075_p0 = scmp.lt.u32.totalorder %s4073_s5, %s4069_s4  ;;  %p4077_p2 = scmp.lt.u32.totalorder %s4069_s4, %s4973_s25 }
0x21ae   : > { %p4071_p11 = pnand %p4070_p10, %p4331_p5 }
0x21af   : > { %p4076_p1 = por %p4075_p0, %p4074_p13 }
0x21b0   : > { %p4072_p12 = pneg %p4071_p11 }
0x21b1   : > { %p4078_p3 = por %p4077_p2, %p4076_p1 }
0x21b3   : > { %p4079_p4 = pnand %p4078_p3, %p4072_p12 }
0x21b5   : > { %4082 = shalt.err (!%p4079_p4)
}
0x21b6   : > { %3910 = dma.vmem_to_hbm [thread:$0]  (%p4331_p5), %s3239_s27, 16, %s4973_s25, %s4949_s28   ;;  %vm3189_vm14 = vcmask 122880  }
0x21b7   : > { %s706_s6 = scalar_lea.vmem [#allocation4], %s4903_s3  ;;  %s5138_s1 = sld [smem:[#allocation25_spill]] }
0x21b8   : > { %s3212_s29 = sshll.u32 %s706_s6, 4  ;;  %s3192_s4 = scalar_lea.sflag [#allocation5], %s4903_s3  ;;  %s5002_s29 = int_to_ptr.vmem [resolvable:$true] %s3212_s29 }
0x21b9   : > { %s4083_s21 = scalar_lea.vmem %s5002_s29, 16  ;;  %s4170_s28 = smov [#allocation4]  }
0x21ba   : > { %p4084_p7 = scmp.ne.s32.totalorder %s5002_s29, %s4083_s21  ;;  %s4087_s25 = sshll.u32 %s4170_s28, 4  ;;  %s4088_s25 = int_to_ptr.vmem [resolvable:$false] %s4087_s25 }
0x21bb   : > { %s4089_s27 = scalar_lea.vmem %s4088_s25, 32  ;;  %p4090_p10 = scmp.lt.s32.totalorder %s5002_s29, %s4088_s25 }
0x21bc   : > { %p4085_p8 = pnand %p4084_p7, %p4331_p5  ;;  %p4091_p11 = scmp.lt.s32.totalorder %s4089_s27, %s4083_s21 }
0x21bd   : > { %s5000_s5 = scalar_lea.hbm %s5138_s1, %s4939_s23 }
0x21be   : > { %p4086_p9 = pneg %p4085_p8  ;;  %p4092_p12 = por %p4091_p11, %p4090_p10 }
0x21c0   : > { %p4093_p13 = pnand %p4092_p12, %p4086_p9 }
0x2264   : > { %v3185_v61 = vpop.f32.mrb[32].mxu1 }
0x2265   : > { %3190 = vst.msk [vmem:[%s706_s6] sm:$0x1] %vm3189_vm14, %v3185_v61  ;;  %v3781_v53 = vpop.f32.mrb[33].mxu1 }
0x2266   : > { %4096 = shalt.err (!%p4093_p13)
}
0x2267   : > { %s4097_s3 = scalar_lea.hbm %s5000_s5, 16  ;;  %s4101_s6 = scalar_lea.hbm %s5138_s1, 32 }
0x2268   : > { %p4098_p0 = scmp.ne.s32.totalorder %s5000_s5, %s4097_s3  ;;  %p4102_p3 = scmp.lt.u32.totalorder %s5000_s5, %s5138_s1 }
0x2269   : > { %p4103_p4 = scmp.lt.u32.totalorder %s4101_s6, %s4097_s3  ;;  %p4105_p8 = scmp.lt.u32.totalorder %s4097_s3, %s5000_s5 }
0x226a   : > { %p4099_p1 = pnand %p4098_p0, %p4331_p5 }
0x226b   : > { %p4104_p7 = por %p4103_p4, %p4102_p3 }
0x226c   : > { %p4100_p2 = pneg %p4099_p1 }
0x226d   : > { %p4106_p9 = por %p4105_p8, %p4104_p7 }
0x226f   : > { %p4107_p10 = pnand %p4106_p9, %p4100_p2 }
0x2271   : > { %4110 = shalt.err (!%p4107_p10)
}
0x2272   : > { %3908 = dma.vmem_to_hbm [thread:$0]  (%p4331_p5), %s5002_s29, 16, %s5000_s5, %s3192_s4  }
0x2273 PF: > { %s5139_s21 = sld [smem:[#allocation13_spill]]  ;;  %s5140_s28 = sld [smem:[#allocation11_spill]] }
0x2279   : > { %p3924_p11 = scmp.ge.s32.totalorder %s5139_s21, 2  ;;  %s3250_s27 = sand.u32 1, %s5140_s28  }
0x227a   : > { %s3251_s23 = scalar_lea.sflag [#allocation5], %s3250_s27 }
0x227b   : > { %p3915_p12 = pnand %p3924_p11, %p4335_p6 }
0x227d   : > { %4128 = dma.done.wait (!%p3915_p12), %s3251_s23, 16  }
0x227e   : > { %4130 = vsyncadd (!%p3915_p12), %s3251_s23, 4294967280  ;;  %s5142_s3 = sadd.s32 4294967294, %s5139_s21  }
0x227f   : > { %s3258_s2 = sand.u32 1, %s5142_s3  }
0x2280   : > { %s3259_s6 = scalar_lea.sflag [#allocation7], %s3258_s2 }
0x2281   : > { %4132 = dma.done.wait (!%p3915_p12), %s3259_s6, 32  }
0x2282   : > { %4134 = vsyncadd (!%p3915_p12), %s3259_s6, 4294967264  ;;  %s5143_s25 = sld [smem:[#allocation14_spill]]  ;;  %s5144_s7 = sld [smem:[#allocation12_spill]] }
0x2283   : > { %s5145_s24 = sld [smem:[#allocation15_spill]]  ;;  %s5146_s4 = smov %s4141_s30 }
0x2288   : > { %p37_p5 = scmp.ge.s32.totalorder %s5143_s25, 4   ;;  %s5147_s30 = smov %s5144_s7 }
0x228a   :  { %39 = sbr.rel (!%p37_p5) target bundleno = 17 (0x11), region = 183 }
0x2291   :  { %3271 = vsyncpa [#allocation5], 1 }
0x2292   :  { %3273 = vsyncpa [#allocation5 + $0x1], 1 }
0x2293   :  { %3274 = vsyncpa [#allocation7], 1 }
0x2294   :  { %3276 = vsyncpa [#allocation7 + $0x1], 1 }

</bundles_post_ra>
